<compile_context>
chip_gen: v7x
topology: tpu7x:2x2x1
jax: 0.10.0
libtpu: 0.0.40
codegen_flags: <defaults>
</compile_context>

<pallas_src>
import jax
import jax.numpy as jnp
from jax.experimental import pallas as pl
from jax.experimental.pallas import tpu as pltpu

BN_EPS = 1e-5
NORM_EPS_SQ = 1e-24     # (F.normalize eps 1e-12)^2, guards all-zero rows
NEG_INF = -1e30         # bias for padded class columns -> exp() == 0 in softmax
LANE = 128


def _round_up(n, m):
    return (n + m - 1) // m * m


# ---------------------------------------------------------------------------
# Kernel: one batch tile per grid step; BN already folded into w/b.
# ---------------------------------------------------------------------------
def head_kernel(x_ref, w1_ref, b1_ref, w2_ref, b2_ref, out_ref):
    x = x_ref[...].astype(jnp.float32)                       # (TB, D)

    # NormEncoder: L2-normalize rows (eps-clamped like F.normalize).
    sq = jnp.sum(x * x, axis=-1, keepdims=True)
    xn = x * jax.lax.rsqrt(jnp.maximum(sq, NORM_EPS_SQ))

    # Linear(D, H) with BatchNorm1d(D) pre-folded, then ReLU.
    # bf16 MXU feeds, f32 accumulation; bias add in f32.
    h = jnp.dot(xn.astype(jnp.bfloat16), w1_ref[...],
                preferred_element_type=jnp.float32) + b1_ref[...]
    h = jnp.maximum(h, 0.0)                                  # (TB, HP)

    # Linear(H, C) with BatchNorm1d(H) pre-folded.
    logits = jnp.dot(h.astype(jnp.bfloat16), w2_ref[...],
                     preferred_element_type=jnp.float32) + b2_ref[...]

    # LogSoftmax over the lane dim. Padded class columns carry bias -1e30 so
    # exp() underflows to 0 and they do not perturb max / logsumexp.
    m = jnp.max(logits, axis=-1, keepdims=True)
    z = logits - m
    lse = jnp.log(jnp.sum(jnp.exp(z), axis=-1, keepdims=True))
    out_ref[...] = (z - lse).astype(out_ref.dtype)


# ---------------------------------------------------------------------------
# Wrapper-side parameter prep: fold BN into Linear, pad to lane width, cast.
# ---------------------------------------------------------------------------
def fold_bn_into_linears(p):
    """Fold the two inference-mode BatchNorm1d layers into the Linear layers."""
    s1 = p["bn1_gamma"] * jax.lax.rsqrt(p["bn1_var"] + BN_EPS)        # (1, D)
    w1f = s1.T * p["w1"]                                              # (D, H)
    b1f = p["b1"] + (p["bn1_beta"] - p["bn1_mean"] * s1) @ p["w1"]    # (1, H)

    s2 = p["bn2_gamma"] * jax.lax.rsqrt(p["bn2_var"] + BN_EPS)        # (1, H)
    w2f = s2.T * p["w2"]                                              # (H, C)
    b2f = p["b2"] + (p["bn2_beta"] - p["bn2_mean"] * s2) @ p["w2"]    # (1, C)
    return w1f, b1f, w2f, b2f


def prepare_kernel_params(p):
    """Fold BN, zero-pad H/C to 128 lanes, pre-cast weights to bf16."""
    w1f, b1f, w2f, b2f = fold_bn_into_linears(p)
    D, H = w1f.shape
    C = w2f.shape[1]
    HP = _round_up(H, LANE)
    CP = _round_up(C, LANE)

    w1p = jnp.zeros((D, HP), jnp.float32).at[:, :H].set(w1f).astype(jnp.bfloat16)
    b1p = jnp.zeros((1, HP), jnp.float32).at[:, :H].set(b1f)
    w2p = jnp.zeros((HP, CP), jnp.float32).at[:H, :C].set(w2f).astype(jnp.bfloat16)
    b2p = jnp.full((1, CP), NEG_INF, jnp.float32).at[:, :C].set(b2f)
    return (w1p, b1p, w2p, b2p), (D, H, C, HP, CP)


def head_forward(x, params, *, tb=512):
    """x: (B, D) float32; params: dict of raw (unfolded) module parameters."""
    # In production the folded/padded params would be computed once and cached.
    (w1p, b1p, w2p, b2p), (D, H, C, HP, CP) = prepare_kernel_params(params)

    B = x.shape[0]
    TB = min(tb, _round_up(B, 8))          # batch tile, multiple of 8 sublanes
    Bp = _round_up(B, TB)
    if Bp != B:
        x = jnp.pad(x, ((0, Bp - B), (0, 0)))   # zero rows are safe (eps clamp)
    grid = (Bp // TB,)

    out = pl.pallas_call(
        head_kernel,
        out_shape=jax.ShapeDtypeStruct((Bp, CP), jnp.float32),
        grid=grid,
        in_specs=[
            pl.BlockSpec((TB, D), lambda i: (i, 0)),    # x: streamed per tile
            pl.BlockSpec((D, HP), lambda i: (0, 0)),    # w1': VMEM-resident
            pl.BlockSpec((1, HP), lambda i: (0, 0)),    # b1'
            pl.BlockSpec((HP, CP), lambda i: (0, 0)),   # w2': VMEM-resident
            pl.BlockSpec((1, CP), lambda i: (0, 0)),    # b2'
        ],
        out_specs=pl.BlockSpec((TB, CP), lambda i: (i, 0)),
        compiler_params=pltpu.CompilerParams(
            # Batch tiles are independent -> shard across both TCs on v7x.
            dimension_semantics=("parallel",),
        ),
    )(x, w1p, b1p, w2p, b2p)

    return out[:B, :C]


# ---------------------------------------------------------------------------
# Deterministic synthetic parameters (PyTorch-style, weights pre-transposed
# to (in_features, out_features)).
# ---------------------------------------------------------------------------
def init_params(key, D, H, C):
    k1, k2, k3, k4, k5, k6 = jax.random.split(key, 6)
    return {
        # BatchNorm1d(D)
        "bn1_gamma": jnp.ones((1, D), jnp.float32),
        "bn1_beta":  jnp.zeros((1, D), jnp.float32),
        "bn1_mean":  0.01 * jax.random.normal(k1, (1, D), jnp.float32),
        "bn1_var":   jnp.ones((1, D), jnp.float32)
                     + 0.1 * jax.random.uniform(k2, (1, D), jnp.float32),
        # Linear(D, H)
        "w1": jax.random.normal(k3, (D, H), jnp.float32) * (1.0 / jnp.sqrt(D)),
        "b1": jnp.zeros((1, H), jnp.float32),
        # BatchNorm1d(H)
        "bn2_gamma": jnp.ones((1, H), jnp.float32),
        "bn2_beta":  jnp.zeros((1, H), jnp.float32),
        "bn2_mean":  0.01 * jax.random.normal(k4, (1, H), jnp.float32),
        "bn2_var":   jnp.ones((1, H), jnp.float32)
                     + 0.1 * jax.random.uniform(k5, (1, H), jnp.float32),
        # Linear(H, C)
        "w2": jax.random.normal(k6, (H, C), jnp.float32) * (1.0 / jnp.sqrt(H)),
        "b2": jnp.zeros((1, C), jnp.float32),
    }


# ---------------------------------------------------------------------------
# References.
# ---------------------------------------------------------------------------
def head_reference_f32(x, p):
    """Unfused full-f32 reference (original module semantics, eval mode)."""
    nrm = jnp.sqrt(jnp.sum(x * x, axis=-1, keepdims=True))
    xn = x / jnp.maximum(nrm, 1e-12)
    y = (xn - p["bn1_mean"]) / jnp.sqrt(p["bn1_var"] + BN_EPS) * p["bn1_gamma"] + p["bn1_beta"]
    h = jnp.maximum(y @ p["w1"] + p["b1"], 0.0)
    h = (h - p["bn2_mean"]) / jnp.sqrt(p["bn2_var"] + BN_EPS) * p["bn2_gamma"] + p["bn2_beta"]
    logits = h @ p["w2"] + p["b2"]
    return jax.nn.log_softmax(logits, axis=1)


def head_reference_folded_bf16(x, p):
    """Reference matching the kernel's BN folding and bf16 MXU feeds."""
    w1f, b1f, w2f, b2f = fold_bn_into_linears(p)
    sq = jnp.sum(x * x, axis=-1, keepdims=True)
    xn = x * jax.lax.rsqrt(jnp.maximum(sq, NORM_EPS_SQ))
    h = jnp.dot(xn.astype(jnp.bfloat16), w1f.astype(jnp.bfloat16),
                preferred_element_type=jnp.float32) + b1f
    h = jnp.maximum(h, 0.0)
    logits = jnp.dot(h.astype(jnp.bfloat16), w2f.astype(jnp.bfloat16),
                     preferred_element_type=jnp.float32) + b2f
    return jax.nn.log_softmax(logits, axis=1)


if __name__ == "__main__":
    # hidden_layers_sizes[-1] must equal input_size (classification Linear is
    # wired with in_features=input_size in the original module).
    B, D, H, C = 1024, 32, 32, 4

    key = jax.random.PRNGKey(0)
    kx, kp = jax.random.split(key)
    x = jax.random.normal(kx, (B, D), jnp.float32)
    params = init_params(kp, D, H, C)

    out = jax.block_until_ready(head_forward(x, params))
    assert out.shape == (B, C)
    assert bool(jnp.all(jnp.isfinite(out)))

    ref_exact = head_reference_folded_bf16(x, params)   # same numerics as kernel
    ref_f32 = head_reference_f32(x, params)             # full-precision module
    err_exact = float(jnp.max(jnp.abs(out - ref_exact)))
    err_f32 = float(jnp.max(jnp.abs(out - ref_f32)))
    assert jnp.allclose(out, ref_exact, atol=2e-3, rtol=0.0), (
        f"bf16-matched reference mismatch: max abs err {err_exact}")
    assert jnp.allclose(out, ref_f32, atol=5e-2, rtol=0.0), (
        f"f32 reference mismatch: max abs err {err_f32}")

    print("KERNEL_OK")
</pallas_src>

<mosaic_0001>
module attributes {stable_mosaic.version = 11 : i64} {
  func.func @head_kernel(%arg0: i32, %arg1: memref<512x32xf32, #tpu.memory_space<vmem>>, %arg2: memref<32x128xbf16, #tpu.memory_space<vmem>>, %arg3: memref<1x128xf32, #tpu.memory_space<vmem>>, %arg4: memref<128x128xbf16, #tpu.memory_space<vmem>>, %arg5: memref<1x128xf32, #tpu.memory_space<vmem>>, %arg6: memref<512x128xf32, #tpu.memory_space<vmem>>) attributes {dimension_semantics = [#tpu.dimension_semantics<parallel>], iteration_bounds = array<i64: 2>, scalar_prefetch = 0 : i64, scratch_operands = 0 : i64, tpu.core_type = #tpu.core_type<tc>, window_params = [{transform_indices = @transform_0, window_bounds = array<i64: 512, 32>}, {pipeline_mode = #tpu.pipeline_mode<synchronous>, transform_indices = @transform_1, window_bounds = array<i64: 32, 128>}, {pipeline_mode = #tpu.pipeline_mode<synchronous>, transform_indices = @transform_2, window_bounds = array<i64: 1, 128>}, {pipeline_mode = #tpu.pipeline_mode<synchronous>, transform_indices = @transform_3, window_bounds = array<i64: 128, 128>}, {pipeline_mode = #tpu.pipeline_mode<synchronous>, transform_indices = @transform_4, window_bounds = array<i64: 1, 128>}, {transform_indices = @transform_5, window_bounds = array<i64: 512, 128>}]} {
    %c0 = arith.constant 0 : index
    %c0_0 = arith.constant 0 : index
    %0 = vector.load %arg1[%c0, %c0_0] : memref<512x32xf32, #tpu.memory_space<vmem>>, vector<512x32xf32>
    %1 = arith.mulf %0, %0 : vector<512x32xf32>
    %cst = arith.constant dense<0.000000e+00> : vector<512xf32>
    %2 = vector.multi_reduction <add>, %1, %cst [1] : vector<512x32xf32> to vector<512xf32>
    %3 = vector.shape_cast %2 : vector<512xf32> to vector<512x1xf32>
    %cst_1 = arith.constant 1.000000e-24 : f32
    %4 = vector.broadcast %cst_1 : f32 to vector<512x1xf32>
    %5 = arith.maximumf %3, %4 : vector<512x1xf32>
    %6 = math.rsqrt %5 : vector<512x1xf32>
    %7 = vector.broadcast %6 : vector<512x1xf32> to vector<512x32xf32>
    %8 = arith.mulf %0, %7 : vector<512x32xf32>
    %9 = arith.truncf %8 : vector<512x32xf32> to vector<512x32xbf16>
    %c0_2 = arith.constant 0 : index
    %c0_3 = arith.constant 0 : index
    %10 = vector.load %arg2[%c0_2, %c0_3] : memref<32x128xbf16, #tpu.memory_space<vmem>>, vector<32x128xbf16>
    %cst_4 = arith.constant dense<0.000000e+00> : vector<512x128xf32>
    %11 = tpu.matmul %9, %10, %cst_4 {dimension_numbers = #tpu.dot_dimension_numbers<[1], [0], [0], [1], [0, 0, 1, 1], [], []>} : vector<512x32xbf16>, vector<32x128xbf16>, vector<512x128xf32> -> vector<512x128xf32>
    %c0_5 = arith.constant 0 : index
    %c0_6 = arith.constant 0 : index
    %12 = vector.load %arg3[%c0_5, %c0_6] : memref<1x128xf32, #tpu.memory_space<vmem>>, vector<1x128xf32>
    %13 = vector.broadcast %12 : vector<1x128xf32> to vector<512x128xf32>
    %14 = arith.addf %11, %13 : vector<512x128xf32>
    %cst_7 = arith.constant 0.000000e+00 : f32
    %15 = vector.broadcast %cst_7 : f32 to vector<512x128xf32>
    %16 = arith.maximumf %14, %15 : vector<512x128xf32>
    %17 = arith.truncf %16 : vector<512x128xf32> to vector<512x128xbf16>
    %c0_8 = arith.constant 0 : index
    %c0_9 = arith.constant 0 : index
    %18 = vector.load %arg4[%c0_8, %c0_9] : memref<128x128xbf16, #tpu.memory_space<vmem>>, vector<128x128xbf16>
    %cst_10 = arith.constant dense<0.000000e+00> : vector<512x128xf32>
    %19 = tpu.matmul %17, %18, %cst_10 {dimension_numbers = #tpu.dot_dimension_numbers<[1], [0], [0], [1], [0, 0, 1, 1], [], []>} : vector<512x128xbf16>, vector<128x128xbf16>, vector<512x128xf32> -> vector<512x128xf32>
    %c0_11 = arith.constant 0 : index
    %c0_12 = arith.constant 0 : index
    %20 = vector.load %arg5[%c0_11, %c0_12] : memref<1x128xf32, #tpu.memory_space<vmem>>, vector<1x128xf32>
    %21 = vector.broadcast %20 : vector<1x128xf32> to vector<512x128xf32>
    %22 = arith.addf %19, %21 : vector<512x128xf32>
    %cst_13 = arith.constant dense<0xFF800000> : vector<512xf32>
    %23 = vector.multi_reduction <maximumf>, %22, %cst_13 [1] : vector<512x128xf32> to vector<512xf32>
    %24 = vector.shape_cast %23 : vector<512xf32> to vector<512x1xf32>
    %25 = vector.broadcast %24 : vector<512x1xf32> to vector<512x128xf32>
    %26 = arith.subf %22, %25 : vector<512x128xf32>
    %27 = math.exp %26 : vector<512x128xf32>
    %cst_14 = arith.constant dense<0.000000e+00> : vector<512xf32>
    %28 = vector.multi_reduction <add>, %27, %cst_14 [1] : vector<512x128xf32> to vector<512xf32>
    %29 = vector.shape_cast %28 : vector<512xf32> to vector<512x1xf32>
    %30 = math.log %29 : vector<512x1xf32>
    %31 = vector.broadcast %30 : vector<512x1xf32> to vector<512x128xf32>
    %32 = arith.subf %26, %31 : vector<512x128xf32>
    %c0_15 = arith.constant 0 : index
    %c0_16 = arith.constant 0 : index
    %33 = vector.load %arg6[%c0_15, %c0_16] : memref<512x128xf32, #tpu.memory_space<vmem>>, vector<512x128xf32>
    tpu.vector_store %arg6[%c0_15, %c0_16], %32 {strides = array<i32>} : memref<512x128xf32, #tpu.memory_space<vmem>>, vector<512x128xf32>,
    return
  }
  func.func @transform_0(%arg0: i32) -> (i32, i32) {
    %c0_i32 = arith.constant 0 : i32
    %c0_i32_0 = arith.constant 0 : i32
    return %arg0, %c0_i32 : i32, i32
  }
  func.func @transform_1(%arg0: i32) -> (i32, i32) {
    %c0_i32 = arith.constant 0 : i32
    %c0_i32_0 = arith.constant 0 : i32
    %c0_i32_1 = arith.constant 0 : i32
    return %c0_i32, %c0_i32_0 : i32, i32
  }
  func.func @transform_2(%arg0: i32) -> (i32, i32) {
    %c0_i32 = arith.constant 0 : i32
    %c0_i32_0 = arith.constant 0 : i32
    %c0_i32_1 = arith.constant 0 : i32
    return %c0_i32, %c0_i32_0 : i32, i32
  }
  func.func @transform_3(%arg0: i32) -> (i32, i32) {
    %c0_i32 = arith.constant 0 : i32
    %c0_i32_0 = arith.constant 0 : i32
    %c0_i32_1 = arith.constant 0 : i32
    return %c0_i32, %c0_i32_0 : i32, i32
  }
  func.func @transform_4(%arg0: i32) -> (i32, i32) {
    %c0_i32 = arith.constant 0 : i32
    %c0_i32_0 = arith.constant 0 : i32
    %c0_i32_1 = arith.constant 0 : i32
    return %c0_i32, %c0_i32_0 : i32, i32
  }
  func.func @transform_5(%arg0: i32) -> (i32, i32) {
    %c0_i32 = arith.constant 0 : i32
    %c0_i32_0 = arith.constant 0 : i32
    return %arg0, %c0_i32 : i32, i32
  }
}

</mosaic_0001>

<bundles_post_ra>
// kernel: tpu_custom_call.1
= control target key start
LH: loop header
LB: loop body
LE: loop exit
PB: predicated region body
PF: predicated region fallthrough
CT: control target
= control target key end

     0   :  { %10 = vsyncpa [#allocation3], 0  ;;  %s4626_s0 = inlined_call_operand.vmem [shape: f32[1024,32], index: 0, kind: input, shape index: {}]   ;;  %s4627_s1 = inlined_call_operand.vmem [shape: bf16[32,128], index: 1, kind: input, shape index: {}]   ;;  %s4628_s2 = inlined_call_operand.vmem [shape: f32[1,128], index: 2, kind: input, shape index: {}]   ;;  %s4629_s3 = inlined_call_operand.vmem [shape: bf16[128,128], index: 3, kind: input, shape index: {}]   ;;  %s4630_s4 = inlined_call_operand.vmem [shape: f32[1,128], index: 4, kind: input, shape index: {}]   ;;  %s4631_s5 = inlined_call_operand.hbm [shape: f32[1024,128], index: 5, kind: output, shape index: {}]  }
   0x1   :  { %12 = vsyncpa [#allocation3 + $0x1], 0  ;;  %s3243_s18 = smov 0   ;;  %s3245_s19 = smov 0  }
   0x2   :  { %s3247_s20 = smov 0   ;;  %s3249_s21 = smov 0  }
   0x3 LB: > { %s3264_s22 = sadd.s32 4294967295, %s3208_s21   ;;  %s2416_s23 = sadd.s32 4294967294, %s3208_s21   ;;  %s3208_s21 = sphi %s3249_s21, %s4763_s21   ;;  %s3204_s20 = sphi %s3247_s20, %s4762_s20   ;;  %s3200_s19 = sphi %s3245_s19, %s4761_s19   ;;  %s3196_s18 = sphi %s3243_s18, %s4760_s18  }
   0x4   : > { %s3268_s24 = sadd.s32 1, %s3208_s21   ;;  %s135_s25 = sadd.s32 1, %s3204_s20 }
   0x5   : > { %s132_s26 = ssub.s32 %s3208_s21, %s3268_s24  ;;  %p145_p0 = scmp.ne.s32.totalorder %s3204_s20, %s3200_s19 }
   0x6   : > { %p133_p1 = scmp.eq.s32.totalorder %s132_s26, 0  ;;  %p146_p2 = scmp.eq.s32.totalorder %s3264_s22, 1 }
   0x7   : > { %p151_p3 = scmp.ne.s32.totalorder %s3200_s19, %s3196_s18  ;;  %p152_p4 = scmp.eq.s32.totalorder %s2416_s23, 1 }
   0x8   : > { %s3279_s27 = scalar_select %p133_p1, %s3204_s20, %s135_s25  }
   0x9   : > { %p3281_p5 = por %p146_p2, %p145_p0  ;;  %p3285_p6 = por %p152_p4, %p151_p3 }
   0xa   : > { %p2419_p7 = scmp.ge.s32.totalorder %s3208_s21, 1  ;;  %p191_p8 = scmp.lt.s32.totalorder %s3208_s21, 3 }
   0xc   : > { %p192_p9 = pnand %p2419_p7, %p191_p8 }
   0xe   : > { %195 = sbr.rel (%p192_p9) target bundleno = 1091 (0x443), region = 40 }
  0x15   : > { %s2421_s30 = sshll.u32 %s3264_s22, 6  ;;  %vm355_vm0 = vcmask 261120   ;;  %v2752_v54 = vld [vmem:[%s4627_s1] sm:$0xff]   ;;  %v2753_v61 = vld [vmem:[%s4627_s1 + $0x8] sm:$0xff]   ;;  %s216_s23 = sand.u32 1, %s3200_s19  }
  0x16   : > { %p220_p10 = scmp.lt.s32.totalorder %s2421_s30, 127  ;;  %2547 = vmatprep.subr.bf16.mxu0 %v2752_v54  ;;  %s2420_s25 = sshll.u32 %s216_s23, 9 }
  0x17   : > { %2548 = vmatpush3.bf16.msra.mxu0 %v2752_v54  ;;  %s4445_s26 = scalar_lea.vmem [#allocation2], %s2420_s25  ;;  %s3210_s11 = smov [#allocation2]  }
  0x18   : > { %s4765_s30 = smov (!%p220_p10, %s2421_s30), 127  ;;  %2549 = vmatprep.subr.bf16.mxu0 %v2753_v61  ;;  %s3150_s12 = sshll.u32 %s3210_s11, 4  ;;  %s3151_s12 = int_to_ptr.vmem [resolvable:$false] %s3150_s12 }
  0x19   : > { %s2422_s6 = sshll.u32 %s4765_s30, 3  ;;  %s2472_s30 = sshll.u32 %s3264_s22, 13 }
  0x1a   : > { %s3295_s9 = scalar_lea.vmem %s4626_s0, %s2422_s6  ;;  %s2354_s6 = sshll.u32 %s4445_s26, 4  ;;  %s4578_s6 = int_to_ptr.vmem [resolvable:$true] %s2354_s6 }
  0x1b   : > { %v3298_v0 = vld [vmem:[%s3295_s9 + $0x10] sm:$0xff]  ;;  %v3301_v1 = vld [vmem:[%s3295_s9] sm:$0xff]  ;;  %v3304_v2 = vld [vmem:[%s3295_s9 + $0x18] sm:$0xff]  ;;  %2550 = vmatpush3.bf16.msra.mxu0 %v2753_v61  ;;  %s4585_s22 = scalar_lea.sflag [#allocation3], %s216_s23  ;;  %s3146_s10 = scalar_lea.vmem %s4578_s6, 8192 }
  0x1c   : > { %v293_v3 = vmul.f32 %v3298_v0, %v3298_v0  ;;  %v291_v4 = vmul.f32 %v3301_v1, %v3301_v1  ;;  %v294_v5 = vmul.f32 %v3304_v2, %v3304_v2  ;;  %v3313_v6 = vld [vmem:[%s3295_s9 + $0x8] sm:$0xff]  ;;  %v3321_v9 = vld [vmem:[%s3295_s9 + $0x20] sm:$0xff]  ;;  %v3332_v16 = vld [vmem:[%s3295_s9 + $0x38] sm:$0xff]  ;;  %p3147_p11 = scmp.ne.s32.totalorder %s4578_s6, %s3146_s10  ;;  %s3152_s13 = scalar_lea.vmem %s3151_s12, 16384 }
  0x1d   : > { %v292_v7 = vmul.f32 %v3313_v6, %v3313_v6  ;;  %v3318_v8 = vld [vmem:[%s3295_s9 + $0x28] sm:$0xff]  ;;  %v295_v15 = vmul.f32 %v3321_v9, %v3321_v9  ;;  %v3335_v17 = vld [vmem:[%s3295_s9 + $0x30] sm:$0xff]  ;;  %v298_v20 = vmul.f32 %v3332_v16, %v3332_v16  ;;  %v3347_v23 = vld [vmem:[%s3295_s9 + $0x40] sm:$0xff]  ;;  %p3153_p0 = scmp.lt.s32.totalorder %s4578_s6, %s3151_s12  ;;  %p3154_p1 = scmp.lt.s32.totalorder %s3152_s13, %s3146_s10 }
  0x1e   : > { %v362_v10 = vsel %vm355_vm0, %v293_v3, 0.0  ;;  %v356_v11 = vsel %vm355_vm0, %v291_v4, 0.0  ;;  %v365_v12 = vsel %vm355_vm0, %v294_v5, 0.0  ;;  %v296_v14 = vmul.f32 %v3318_v8, %v3318_v8  ;;  %v3344_v22 = vld [vmem:[%s3295_s9 + $0x48] sm:$0xff]  ;;  %v3356_v28 = vld [vmem:[%s3295_s9 + $0x58] sm:$0xff]  ;;  %v3359_v29 = vld [vmem:[%s3295_s9 + $0x50] sm:$0xff]  ;;  %p3148_p12 = pnand %p3147_p11, %p3281_p5 }
  0x1f   : > { %363 = vadd.xlane.f32.xlu1 %v362_v10  ;;  %357 = vadd.xlane.f32.xlu0 %v356_v11  ;;  %v359_v13 = vsel %vm355_vm0, %v292_v7, 0.0  ;;  %v368_v19 = vsel %vm355_vm0, %v295_v15, 0.0  ;;  %v297_v21 = vmul.f32 %v3335_v17, %v3335_v17  ;;  %v377_v24 = vsel %vm355_vm0, %v298_v20, 0.0  ;;  %v3368_v34 = vld [vmem:[%s3295_s9 + $0x68] sm:$0xff]  ;;  %v3371_v35 = vld [vmem:[%s3295_s9 + $0x60] sm:$0xff]  ;;  %v3380_v40 = vld [vmem:[%s3295_s9 + $0x78] sm:$0xff]  ;;  %p3155_p2 = por %p3154_p1, %p3153_p0 }
  0x20   : > { %v371_v18 = vsel %vm355_vm0, %v296_v14, 0.0  ;;  %v300_v26 = vmul.f32 %v3344_v22, %v3344_v22  ;;  %v299_v27 = vmul.f32 %v3347_v23, %v3347_v23  ;;  %v302_v32 = vmul.f32 %v3356_v28, %v3356_v28  ;;  %v3383_v41 = vld [vmem:[%s3295_s9 + $0x70] sm:$0xff]  ;;  %v3392_v46 = vld [vmem:[%s3295_s9 + $0x88] sm:$0xff]  ;;  %v3395_v47 = vld [vmem:[%s3295_s9 + $0x80] sm:$0xff]  ;;  %p3149_p13 = pneg %p3148_p12 }
  0x21   : > { %v374_v25 = vsel %vm355_vm0, %v297_v21, 0.0  ;;  %v301_v33 = vmul.f32 %v3359_v29, %v3359_v29  ;;  %v304_v38 = vmul.f32 %v3368_v34, %v3368_v34  ;;  %v303_v39 = vmul.f32 %v3371_v35, %v3371_v35  ;;  %v3404_v52 = vld [vmem:[%s3295_s9 + $0x98] sm:$0xff]  ;;  %v3407_v53 = vld [vmem:[%s3295_s9 + $0x90] sm:$0xff]  ;;  %v3419_v59 = vld [vmem:[%s3295_s9 + $0xa8] sm:$0xff] }
  0x22   : > { %v383_v30 = vsel %vm355_vm0, %v300_v26, 0.0  ;;  %v380_v31 = vsel %vm355_vm0, %v299_v27, 0.0  ;;  %v389_v36 = vsel %vm355_vm0, %v302_v32, 0.0  ;;  %v306_v44 = vmul.f32 %v3380_v40, %v3380_v40  ;;  %v3422_v60 = vld [vmem:[%s3295_s9 + $0xa0] sm:$0xff]  ;;  %v3434_v5 = vld [vmem:[%s3295_s9 + $0xb8] sm:$0xff]  ;;  %v3437_v7 = vld [vmem:[%s3295_s9 + $0xb0] sm:$0xff]  ;;  %p3156_p3 = pnand %p3155_p2, %p3149_p13 }
  0x23   : > { %366 = vadd.xlane.f32.xlu1 %v365_v12  ;;  %360 = vadd.xlane.f32.xlu0 %v359_v13  ;;  %v386_v37 = vsel %vm355_vm0, %v301_v33, 0.0  ;;  %v395_v42 = vsel %vm355_vm0, %v304_v38, 0.0  ;;  %v392_v43 = vsel %vm355_vm0, %v303_v39, 0.0  ;;  %v305_v45 = vmul.f32 %v3383_v41, %v3383_v41  ;;  %v3446_v14 = vld [vmem:[%s3295_s9 + $0xc8] sm:$0xff]  ;;  %v3449_v15 = vld [vmem:[%s3295_s9 + $0xc0] sm:$0xff]  ;;  %v3509_v61 = vld [vmem:[%s3295_s9 + $0x110] sm:$0xff] }
  0x24   : > { %v401_v48 = vsel %vm355_vm0, %v306_v44, 0.0  ;;  %v308_v50 = vmul.f32 %v3392_v46, %v3392_v46  ;;  %v307_v51 = vmul.f32 %v3395_v47, %v3395_v47  ;;  %v310_v57 = vmul.f32 %v3404_v52, %v3404_v52  ;;  %v3470_v32 = vld [vmem:[%s3295_s9 + $0xe8] sm:$0xff]  ;;  %v3473_v33 = vld [vmem:[%s3295_s9 + $0xe0] sm:$0xff] }
  0x25   : > { %v398_v49 = vsel %vm355_vm0, %v305_v45, 0.0  ;;  %v309_v58 = vmul.f32 %v3407_v53, %v3407_v53  ;;  %v312_v3 = vmul.f32 %v3419_v59, %v3419_v59  ;;  %v311_v4 = vmul.f32 %v3422_v60, %v3422_v60 }
  0x26   : > { %v407_v55 = vsel %vm355_vm0, %v308_v50, 0.0  ;;  %v404_v56 = vsel %vm355_vm0, %v307_v51, 0.0  ;;  %v413_v62 = vsel %vm355_vm0, %v310_v57, 0.0  ;;  %v314_v12 = vmul.f32 %v3434_v5, %v3434_v5  ;;  %v3494_v50 = vld [vmem:[%s3295_s9 + $0x108] sm:$0xff]  ;;  %v3497_v51 = vld [vmem:[%s3295_s9 + $0x100] sm:$0xff] }
  0x27   : > { %372 = vadd.xlane.f32.xlu1 %v371_v18  ;;  %369 = vadd.xlane.f32.xlu0 %v368_v19  ;;  %v410_v63 = vsel %vm355_vm0, %v309_v58, 0.0  ;;  %v419_v10 = vsel %vm355_vm0, %v312_v3, 0.0  ;;  %v416_v11 = vsel %vm355_vm0, %v311_v4, 0.0  ;;  %v313_v13 = vmul.f32 %v3437_v7, %v3437_v7  ;;  %v3506_v58 = vld [vmem:[%s3295_s9 + $0x118] sm:$0xff] }
  0x28   : > { %v425_v18 = vsel %vm355_vm0, %v314_v12, 0.0  ;;  %v316_v20 = vmul.f32 %v3446_v14, %v3446_v14  ;;  %v315_v21 = vmul.f32 %v3449_v15, %v3449_v15  ;;  %v320_v38 = vmul.f32 %v3470_v32, %v3470_v32 }
  0x29   : > { %v422_v19 = vsel %vm355_vm0, %v313_v13, 0.0  ;;  %v319_v39 = vmul.f32 %v3473_v33, %v3473_v33  ;;  %v323_v57 = vmul.f32 %v3497_v51, %v3497_v51  ;;  %v326_v3 = vmul.f32 %v3506_v58, %v3506_v58 }
  0x2a   : > { %v431_v26 = vsel %vm355_vm0, %v316_v20, 0.0  ;;  %v428_v27 = vsel %vm355_vm0, %v315_v21, 0.0  ;;  %v443_v44 = vsel %vm355_vm0, %v320_v38, 0.0  ;;  %v325_v4 = vmul.f32 %v3509_v61, %v3509_v61  ;;  %v3530_v20 = vld [vmem:[%s3295_s9 + $0x138] sm:$0xff]  ;;  %v3533_v21 = vld [vmem:[%s3295_s9 + $0x130] sm:$0xff] }
  0x2b   : > { %378 = vadd.xlane.f32.xlu1 %v377_v24  ;;  %375 = vadd.xlane.f32.xlu0 %v374_v25  ;;  %v3458_v24 = vld [vmem:[%s3295_s9 + $0xd8] sm:$0xff]  ;;  %v3461_v25 = vld [vmem:[%s3295_s9 + $0xd0] sm:$0xff]  ;;  %v440_v45 = vsel %vm355_vm0, %v319_v39, 0.0  ;;  %v461_v12 = vsel %vm355_vm0, %v326_v3, 0.0 }
  0x2c   : > { %v458_v13 = vsel %vm355_vm0, %v325_v4, 0.0 }
  0x2f   : > { %384 = vadd.xlane.f32.xlu1 %v383_v30  ;;  %381 = vadd.xlane.f32.xlu0 %v380_v31  ;;  %v318_v30 = vmul.f32 %v3458_v24, %v3458_v24  ;;  %v317_v31 = vmul.f32 %v3461_v25, %v3461_v25 }
  0x33   : > { %390 = vadd.xlane.f32.xlu1 %v389_v36  ;;  %387 = vadd.xlane.f32.xlu0 %v386_v37  ;;  %v437_v36 = vsel %vm355_vm0, %v318_v30, 0.0  ;;  %v434_v37 = vsel %vm355_vm0, %v317_v31, 0.0  ;;  %v330_v30 = vmul.f32 %v3530_v20, %v3530_v20  ;;  %v329_v31 = vmul.f32 %v3533_v21, %v3533_v21 }
  0x35   : > { %v473_v38 = vsel %vm355_vm0, %v330_v30, 0.0  ;;  %v470_v39 = vsel %vm355_vm0, %v329_v31, 0.0 }
  0x37   : > { %396 = vadd.xlane.f32.xlu1 %v395_v42  ;;  %393 = vadd.xlane.f32.xlu0 %v392_v43  ;;  %v3482_v42 = vld [vmem:[%s3295_s9 + $0xf8] sm:$0xff]  ;;  %v3485_v43 = vld [vmem:[%s3295_s9 + $0xf0] sm:$0xff] }
  0x3b   : > { %402 = vadd.xlane.f32.xlu1 %v401_v48  ;;  %399 = vadd.xlane.f32.xlu0 %v398_v49  ;;  %v322_v48 = vmul.f32 %v3482_v42, %v3482_v42  ;;  %v321_v49 = vmul.f32 %v3485_v43, %v3485_v43 }
  0x3d   : > { %v449_v54 = vsel %vm355_vm0, %v322_v48, 0.0  ;;  %v3554_v48 = vld [vmem:[%s3295_s9 + $0x158] sm:$0xff] }
  0x3f   : > { %408 = vadd.xlane.f32.xlu1 %v407_v55  ;;  %405 = vadd.xlane.f32.xlu0 %v404_v56  ;;  %v446_v55 = vsel %vm355_vm0, %v321_v49, 0.0  ;;  %v324_v56 = vmul.f32 %v3494_v50, %v3494_v50  ;;  %v3557_v49 = vld [vmem:[%s3295_s9 + $0x150] sm:$0xff] }
  0x43   : > { %414 = vadd.xlane.f32.xlu1 %v413_v62  ;;  %411 = vadd.xlane.f32.xlu0 %v410_v63  ;;  %v455_v62 = vsel %vm355_vm0, %v324_v56, 0.0  ;;  %v452_v63 = vsel %vm355_vm0, %v323_v57, 0.0  ;;  %v334_v56 = vmul.f32 %v3554_v48, %v3554_v48  ;;  %v333_v57 = vmul.f32 %v3557_v49, %v3557_v49 }
  0x45   : > { %v485_v3 = vsel %vm355_vm0, %v334_v56, 0.0  ;;  %v482_v4 = vsel %vm355_vm0, %v333_v57, 0.0  ;;  %v3602_v56 = vld [vmem:[%s3295_s9 + $0x198] sm:$0xff]  ;;  %v3605_v57 = vld [vmem:[%s3295_s9 + $0x190] sm:$0xff] }
  0x46   : > { %4681 = vst [vmem:[#allocation10_spill] sm:$0xff] %v3602_v56  ;;  %4682 = vst [vmem:[#allocation11_spill] sm:$0xff] %v3605_v57 }
  0x47   : > { %420 = vadd.xlane.f32.xlu1 %v419_v10  ;;  %417 = vadd.xlane.f32.xlu0 %v416_v11  ;;  %v3518_v10 = vld [vmem:[%s3295_s9 + $0x128] sm:$0xff]  ;;  %v3521_v11 = vld [vmem:[%s3295_s9 + $0x120] sm:$0xff] }
  0x4b   : > { %426 = vadd.xlane.f32.xlu1 %v425_v18  ;;  %423 = vadd.xlane.f32.xlu0 %v422_v19  ;;  %v328_v18 = vmul.f32 %v3518_v10, %v3518_v10  ;;  %v327_v19 = vmul.f32 %v3521_v11, %v3521_v11 }
  0x4f   : > { %432 = vadd.xlane.f32.xlu1 %v431_v26  ;;  %429 = vadd.xlane.f32.xlu0 %v428_v27  ;;  %v467_v26 = vsel %vm355_vm0, %v328_v18, 0.0  ;;  %v464_v27 = vsel %vm355_vm0, %v327_v19, 0.0  ;;  %v3578_v18 = vld [vmem:[%s3295_s9 + $0x178] sm:$0xff]  ;;  %v3581_v19 = vld [vmem:[%s3295_s9 + $0x170] sm:$0xff] }
  0x50   : > { %4677 = vst [vmem:[#allocation6_spill] sm:$0xff] %v3578_v18  ;;  %4678 = vst [vmem:[#allocation7_spill] sm:$0xff] %v3581_v19  ;;  %v338_v30 = vmul.f32 %v3578_v18, %v3578_v18  ;;  %v337_v31 = vmul.f32 %v3581_v19, %v3581_v19 }
  0x53   : > { %438 = vadd.xlane.f32.xlu1 %v437_v36  ;;  %435 = vadd.xlane.f32.xlu0 %v434_v37  ;;  %v3542_v36 = vld [vmem:[%s3295_s9 + $0x148] sm:$0xff]  ;;  %v3545_v37 = vld [vmem:[%s3295_s9 + $0x140] sm:$0xff] }
  0x57   : > { %444 = vadd.xlane.f32.xlu1 %v443_v44  ;;  %441 = vadd.xlane.f32.xlu0 %v440_v45  ;;  %v332_v44 = vmul.f32 %v3542_v36, %v3542_v36  ;;  %v331_v45 = vmul.f32 %v3545_v37, %v3545_v37 }
  0x5b   : > { %450 = vadd.xlane.f32.xlu1 %v449_v54  ;;  %447 = vadd.xlane.f32.xlu0 %v446_v55  ;;  %v479_v54 = vsel %vm355_vm0, %v332_v44, 0.0  ;;  %v476_v55 = vsel %vm355_vm0, %v331_v45, 0.0  ;;  %v497_v44 = vsel %vm355_vm0, %v338_v30, 0.0  ;;  %v494_v45 = vsel %vm355_vm0, %v337_v31, 0.0 }
  0x5f   : > { %456 = vadd.xlane.f32.xlu1 %v455_v62  ;;  %453 = vadd.xlane.f32.xlu0 %v452_v63  ;;  %v3566_v62 = vld [vmem:[%s3295_s9 + $0x168] sm:$0xff]  ;;  %v3569_v63 = vld [vmem:[%s3295_s9 + $0x160] sm:$0xff] }
  0x60   : > { %4676 = vst [vmem:[#allocation5_spill] sm:$0xff] %v3569_v63 }
  0x63   : > { %462 = vadd.xlane.f32.xlu1 %v461_v12  ;;  %459 = vadd.xlane.f32.xlu0 %v458_v13  ;;  %v336_v12 = vmul.f32 %v3566_v62, %v3566_v62  ;;  %v335_v13 = vmul.f32 %v3569_v63, %v3569_v63 }
  0x67   : > { %468 = vadd.xlane.f32.xlu1 %v467_v26  ;;  %465 = vadd.xlane.f32.xlu0 %v464_v27  ;;  %v491_v26 = vsel %vm355_vm0, %v336_v12, 0.0  ;;  %v488_v27 = vsel %vm355_vm0, %v335_v13, 0.0  ;;  %v342_v12 = vmul.f32 %v3602_v56, %v3602_v56  ;;  %v341_v13 = vmul.f32 %v3605_v57, %v3605_v57 }
  0x69   : > { %v509_v30 = vsel %vm355_vm0, %v342_v12, 0.0  ;;  %v506_v31 = vsel %vm355_vm0, %v341_v13, 0.0 }
  0x6b   : > { %474 = vadd.xlane.f32.xlu1 %v473_v38  ;;  %471 = vadd.xlane.f32.xlu0 %v470_v39  ;;  %v3590_v38 = vld [vmem:[%s3295_s9 + $0x188] sm:$0xff]  ;;  %v3593_v39 = vld [vmem:[%s3295_s9 + $0x180] sm:$0xff] }
  0x6c   : > { %4679 = vst [vmem:[#allocation8_spill] sm:$0xff] %v3590_v38  ;;  %4680 = vst [vmem:[#allocation9_spill] sm:$0xff] %v3593_v39 }
  0x6f   : > { %480 = vadd.xlane.f32.xlu1 %v479_v54  ;;  %477 = vadd.xlane.f32.xlu0 %v476_v55  ;;  %v340_v54 = vmul.f32 %v3590_v38, %v3590_v38  ;;  %v339_v55 = vmul.f32 %v3593_v39, %v3593_v39 }
  0x73   : > { %486 = vadd.xlane.f32.xlu1 %v485_v3  ;;  %483 = vadd.xlane.f32.xlu0 %v482_v4  ;;  %v503_v3 = vsel %vm355_vm0, %v340_v54, 0.0  ;;  %v500_v4 = vsel %vm355_vm0, %v339_v55, 0.0  ;;  %v3626_v54 = vld [vmem:[%s3295_s9 + $0x1b8] sm:$0xff]  ;;  %v3629_v55 = vld [vmem:[%s3295_s9 + $0x1b0] sm:$0xff] }
  0x74   : > { %4685 = vst [vmem:[#allocation14_spill] sm:$0xff] %v3626_v54  ;;  %4686 = vst [vmem:[#allocation15_spill] sm:$0xff] %v3629_v55  ;;  %v346_v12 = vmul.f32 %v3626_v54, %v3626_v54  ;;  %v345_v13 = vmul.f32 %v3629_v55, %v3629_v55  ;;  %v3650_v54 = vld [vmem:[%s3295_s9 + $0x1d8] sm:$0xff]  ;;  %v3653_v55 = vld [vmem:[%s3295_s9 + $0x1d0] sm:$0xff] }
  0x75   : > { %4689 = vst [vmem:[#allocation18_spill] sm:$0xff] %v3650_v54  ;;  %4690 = vst [vmem:[#allocation19_spill] sm:$0xff] %v3653_v55 }
  0x77   : > { %492 = vadd.xlane.f32.xlu1 %v491_v26  ;;  %489 = vadd.xlane.f32.xlu0 %v488_v27  ;;  %v3614_v26 = vld [vmem:[%s3295_s9 + $0x1a8] sm:$0xff]  ;;  %v3617_v27 = vld [vmem:[%s3295_s9 + $0x1a0] sm:$0xff] }
  0x78   : > { %4683 = vst [vmem:[#allocation12_spill] sm:$0xff] %v3614_v26  ;;  %4684 = vst [vmem:[#allocation13_spill] sm:$0xff] %v3617_v27 }
  0x7b   : > { %498 = vadd.xlane.f32.xlu1 %v497_v44  ;;  %495 = vadd.xlane.f32.xlu0 %v494_v45  ;;  %v344_v44 = vmul.f32 %v3614_v26, %v3614_v26  ;;  %v343_v45 = vmul.f32 %v3617_v27, %v3617_v27  ;;  %v3638_v26 = vld [vmem:[%s3295_s9 + $0x1c8] sm:$0xff]  ;;  %v3641_v27 = vld [vmem:[%s3295_s9 + $0x1c0] sm:$0xff] }
  0x7c   : > { %4687 = vst [vmem:[#allocation16_spill] sm:$0xff] %v3638_v26  ;;  %4688 = vst [vmem:[#allocation17_spill] sm:$0xff] %v3641_v27 }
  0x7f   : > { %504 = vadd.xlane.f32.xlu1 %v503_v3  ;;  %501 = vadd.xlane.f32.xlu0 %v500_v4  ;;  %v515_v3 = vsel %vm355_vm0, %v344_v44, 0.0  ;;  %v512_v4 = vsel %vm355_vm0, %v343_v45, 0.0  ;;  %v348_v44 = vmul.f32 %v3638_v26, %v3638_v26  ;;  %v347_v45 = vmul.f32 %v3641_v27, %v3641_v27  ;;  %v3662_v26 = vld [vmem:[%s3295_s9 + $0x1e8] sm:$0xff]  ;;  %v3665_v27 = vld [vmem:[%s3295_s9 + $0x1e0] sm:$0xff] }
  0x80   : > { %4691 = vst [vmem:[#allocation20_spill] sm:$0xff] %v3662_v26  ;;  %4692 = vst [vmem:[#allocation21_spill] sm:$0xff] %v3665_v27 }
  0x83   : > { %510 = vadd.xlane.f32.xlu1 %v509_v30  ;;  %507 = vadd.xlane.f32.xlu0 %v506_v31  ;;  %v521_v30 = vsel %vm355_vm0, %v346_v12, 0.0  ;;  %v518_v31 = vsel %vm355_vm0, %v345_v13, 0.0  ;;  %v350_v12 = vmul.f32 %v3650_v54, %v3650_v54  ;;  %v349_v13 = vmul.f32 %v3653_v55, %v3653_v55  ;;  %v3677_v54 = vld [vmem:[%s3295_s9 + $0x1f0] sm:$0xff] }
  0x84   : > { %4694 = vst [vmem:[#allocation23_spill] sm:$0xff] %v3677_v54 }
  0x85   : > { %v533_v57 = vsel %vm355_vm0, %v350_v12, 0.0  ;;  %v353_v12 = vmul.f32 %v3677_v54, %v3677_v54 }
  0x87   : > { %516 = vadd.xlane.f32.xlu1 %v515_v3  ;;  %513 = vadd.xlane.f32.xlu0 %v512_v4  ;;  %v527_v3 = vsel %vm355_vm0, %v348_v44, 0.0  ;;  %v524_v4 = vsel %vm355_vm0, %v347_v45, 0.0  ;;  %v351_v44 = vmul.f32 %v3665_v27, %v3665_v27  ;;  %v3674_v45 = vld [vmem:[%s3295_s9 + $0x1f8] sm:$0xff]  ;;  %v542_v27 = vsel %vm355_vm0, %v353_v12, 0.0  ;;  %s4576_s9 = scalar_lea.hbm %s4631_s5, %s2472_s30 }
  0x88   : > { %4693 = vst [vmem:[#allocation22_spill] sm:$0xff] %v3674_v45 }
  0x8b   : > { %522 = vadd.xlane.f32.xlu1 %v521_v30  ;;  %519 = vadd.xlane.f32.xlu0 %v518_v31  ;;  %v530_v30 = vsel %vm355_vm0, %v349_v13, 0.0  ;;  %v352_v31 = vmul.f32 %v3662_v26, %v3662_v26 }
  0x8d   : > { %v539_v55 = vsel %vm355_vm0, %v352_v31, 0.0 }
  0x8f   : > { %528 = vadd.xlane.f32.xlu1 %v527_v3  ;;  %525 = vadd.xlane.f32.xlu0 %v524_v4  ;;  %v536_v3 = vsel %vm355_vm0, %v351_v44, 0.0  ;;  %v354_v4 = vmul.f32 %v3674_v45, %v3674_v45 }
  0x91   : > { %v545_v13 = vsel %vm355_vm0, %v354_v4, 0.0 }
  0x93   : > { %534 = vadd.xlane.f32.xlu1 %v533_v57  ;;  %531 = vadd.xlane.f32.xlu0 %v530_v30  ;;  %v3690_v57 = vld [vmem:[%s4629_s3] sm:$0xff]  }
  0x94   : > { %2615 = vmatprep.subr.bf16.mxu0 %v3690_v57  ;;  %2695 = vmatprep.subr.bf16.mxu1 %v3690_v57 }
  0x95   : > { %2703 = vmatpush3.bf16.msra.mxu1 %v3690_v57 }
  0x97   : > { %540 = vadd.xlane.f32.xlu1 %v539_v55  ;;  %537 = vadd.xlane.f32.xlu0 %v536_v3  ;;  %v3698_v3 = vld [vmem:[%s4629_s3 + $0x8] sm:$0xff]  }
  0x98   : > { %2696 = vmatprep.subr.bf16.mxu1 %v3698_v3 }
  0x99   : > { %2704 = vmatpush3.bf16.msra.mxu1 %v3698_v3 }
  0x9b   : > { %546 = vadd.xlane.f32.xlu1 %v545_v13  ;;  %543 = vadd.xlane.f32.xlu0 %v542_v27 }
  0xac   : > { %v364_v30 = vpop.xlane.xlu1 %363  ;;  %v358_v55 = vpop.xlane.xlu0 %357 }
  0xad   : > { %v550_v31 = vmax.f32 %v364_v30, 1e-24  ;;  %v548_v44 = vmax.f32 %v358_v55, 1e-24 }
  0xaf   : > { %2762 = vrsqrt.f32 %v550_v31 }
  0xb0   : > { %v367_v27 = vpop.xlane.xlu1 %366  ;;  %v361_v4 = vpop.xlane.xlu0 %360  ;;  %2764 = vrsqrt.f32 %v548_v44 }
  0xb1   : > { %v551_v12 = vmax.f32 %v367_v27, 1e-24  ;;  %v549_v13 = vmax.f32 %v361_v4, 1e-24 }
  0xb3   : > { %2766 = vrsqrt.f32 %v551_v12  ;;  %v3705_v12 = vld [vmem:[%s4629_s3 + $0x10] sm:$0xff]  }
  0xb4   : > { %2768 = vrsqrt.f32 %v549_v13  ;;  %v373_v54 = vpop.xlane.xlu1 %372  ;;  %v370_v30 = vpop.xlane.xlu0 %369  ;;  %2697 = vmatprep.subr.bf16.mxu1 %v3705_v12 }
  0xb5   : > { %v553_v55 = vmax.f32 %v373_v54, 1e-24  ;;  %v552_v45 = vmax.f32 %v370_v30, 1e-24  ;;  %2705 = vmatpush3.bf16.msra.mxu1 %v3705_v12 }
  0xb7   : > { %2770 = vrsqrt.f32 %v553_v55 }
  0xb8   : > { %2772 = vrsqrt.f32 %v552_v45  ;;  %v379_v26 = vpop.xlane.xlu1 %378  ;;  %v376_v56 = vpop.xlane.xlu0 %375 }
  0xb9   : > { %v555_v39 = vmax.f32 %v379_v26, 1e-24  ;;  %v554_v38 = vmax.f32 %v376_v56, 1e-24  ;;  %v2763_v31 = vpop.eup %2762 }
  0xba   : > { %v2765_v27 = vpop.eup %2764  ;;  %v678_v45 = vmul.f32 %v2763_v31, %v3298_v0 }
  0xbb   : > { %2774 = vrsqrt.f32 %v555_v39  ;;  %v3712_v39 = vld [vmem:[%s4629_s3 + $0x18] sm:$0xff]  }
  0xbc   : > { %2776 = vrsqrt.f32 %v554_v38  ;;  %v385_v4 = vpop.xlane.xlu1 %384  ;;  %v382_v44 = vpop.xlane.xlu0 %381  ;;  %v676_v38 = vmul.f32 %v2765_v27, %v3301_v1  ;;  %2698 = vmatprep.subr.bf16.mxu1 %v3712_v39  ;;  %v3723_v1 = vld [vmem:[%s4629_s3 + $0x20] sm:$0xff]  }
  0xbd   : > { %v2767_v13 = vpop.eup %2766  ;;  %v557_v54 = vmax.f32 %v385_v4, 1e-24  ;;  %v556_v30 = vmax.f32 %v382_v44, 1e-24  ;;  %2706 = vmatpush3.bf16.msra.mxu1 %v3712_v39 }
  0xbe   : > { %v2769_v55 = vpop.eup %2768  ;;  %v679_v26 = vmul.f32 %v2767_v13, %v3304_v2  ;;  %2699 = vmatprep.subr.bf16.mxu1 %v3723_v1 }
  0xbf   : > { %2778 = vrsqrt.f32 %v557_v54  ;;  %v677_v56 = vmul.f32 %v2769_v55, %v3313_v6 }
  0xc0   : > { %2780 = vrsqrt.f32 %v556_v30  ;;  %v391_v4 = vpop.xlane.xlu1 %390  ;;  %v388_v44 = vpop.xlane.xlu0 %387  ;;  %v741_v0 = vpack.c.bf16 %v679_v26, %v678_v45 }
  0xc1   : > { %v2771_v2 = vpop.eup %2770  ;;  %v559_v31 = vmax.f32 %v391_v4, 1e-24  ;;  %v558_v13 = vmax.f32 %v388_v44, 1e-24  ;;  %v740_v19 = vpack.c.bf16 %v677_v56, %v676_v38  ;;  %2707 = vmatpush3.bf16.msra.mxu1 %v3723_v1 }
  0xc2   : > { %v2773_v18 = vpop.eup %2772  ;;  %v681_v63 = vmul.f32 %v2771_v2, %v3318_v8 }
  0xc3   : > { %2782 = vrsqrt.f32 %v559_v31  ;;  %2551 = vmatprep.mubr.msk.bf16.mxu0 %vm355_vm0, %v740_v19  ;;  %v680_v6 = vmul.f32 %v2773_v18, %v3321_v9  ;;  %v3736_v9 = vld [vmem:[%s4629_s3 + $0x28] sm:$0xff]  }
  0xc4   : > { %2784 = vrsqrt.f32 %v558_v13  ;;  %2552 = vmatmul.mubr.msk.bf16.vlgmr.msra.gmra.mrb[0].mxu0 %vm355_vm0, %v741_v0  ;;  %v397_v27 = vpop.xlane.xlu1 %396  ;;  %v394_v54 = vpop.xlane.xlu0 %393  ;;  %2700 = vmatprep.subr.bf16.mxu1 %v3736_v9 }
  0xc5   : > { %v2775_v8 = vpop.eup %2774  ;;  %v561_v30 = vmax.f32 %v397_v27, 1e-24  ;;  %v560_v55 = vmax.f32 %v394_v54, 1e-24  ;;  %v742_v45 = vpack.c.bf16 %v681_v63, %v680_v6  ;;  %2616 = vmatpush3.bf16.msra.mxu0 %v3690_v57  ;;  %2708 = vmatpush3.bf16.msra.mxu1 %v3736_v9 }
  0xc6   : > { %v2777_v26 = vpop.eup %2776  ;;  %v683_v19 = vmul.f32 %v2775_v8, %v3332_v16  ;;  %2617 = vmatprep.subr.bf16.mxu0 %v3698_v3 }
  0xc7   : > { %2786 = vrsqrt.f32 %v561_v30  ;;  %2555 = vmatprep.mubr.msk.bf16.mxu0 %vm355_vm0, %v742_v45  ;;  %v682_v18 = vmul.f32 %v2777_v26, %v3335_v17  ;;  %v3748_v17 = vld [vmem:[%s4629_s3 + $0x30] sm:$0xff]  }
  0xc8   : > { %2788 = vrsqrt.f32 %v560_v55  ;;  %v403_v63 = vpop.xlane.xlu1 %402  ;;  %v400_v57 = vpop.xlane.xlu0 %399  ;;  %2701 = vmatprep.subr.bf16.mxu1 %v3748_v17 }
  0xc9   : > { %v2779_v16 = vpop.eup %2778  ;;  %v563_v38 = vmax.f32 %v403_v63, 1e-24  ;;  %v562_v56 = vmax.f32 %v400_v57, 1e-24  ;;  %v743_v4 = vpack.c.bf16 %v683_v19, %v682_v18  ;;  %2618 = vmatpush3.bf16.msra.mxu0 %v3698_v3  ;;  %2709 = vmatpush3.bf16.msra.mxu1 %v3748_v17 }
  0xca   : > { %v2781_v44 = vpop.eup %2780  ;;  %v685_v0 = vmul.f32 %v2779_v16, %v3344_v22  ;;  %2619 = vmatprep.subr.bf16.mxu0 %v3705_v12 }
  0xcb   : > { %2790 = vrsqrt.f32 %v563_v38  ;;  %v684_v2 = vmul.f32 %v2781_v44, %v3347_v23  ;;  %v3760_v23 = vld [vmem:[%s4629_s3 + $0x38] sm:$0xff]  }
  0xcc   : > { %2792 = vrsqrt.f32 %v562_v56  ;;  %2556 = vmatmul.mubr.msk.bf16.gmra.mrb[4].mxu0 %vm355_vm0, %v743_v4  ;;  %v409_v31 = vpop.xlane.xlu1 %408  ;;  %v406_v3 = vpop.xlane.xlu0 %405  ;;  %2702 = vmatprep.subr.bf16.mxu1 %v3760_v23 }
  0xcd   : > { %v2783_v22 = vpop.eup %2782  ;;  %v565_v13 = vmax.f32 %v409_v31, 1e-24  ;;  %v564_v6 = vmax.f32 %v406_v3, 1e-24  ;;  %v744_v27 = vpack.c.bf16 %v685_v0, %v684_v2  ;;  %2620 = vmatpush3.bf16.msra.mxu0 %v3705_v12  ;;  %2710 = vmatpush3.bf16.msra.mxu1 %v3760_v23 }
  0xce   : > { %v2785_v54 = vpop.eup %2784  ;;  %v687_v8 = vmul.f32 %v2783_v22, %v3356_v28  ;;  %2621 = vmatprep.subr.bf16.mxu0 %v3712_v39 }
  0xcf   : > { %2794 = vrsqrt.f32 %v565_v13  ;;  %2559 = vmatprep.mubr.msk.bf16.mxu0 %vm355_vm0, %v744_v27  ;;  %v686_v30 = vmul.f32 %v2785_v54, %v3359_v29 }
  0xd0   : > { %2796 = vrsqrt.f32 %v564_v6  ;;  %v415_v55 = vpop.xlane.xlu1 %414  ;;  %v412_v12 = vpop.xlane.xlu0 %411 }
  0xd1   : > { %v2787_v28 = vpop.eup %2786  ;;  %v567_v45 = vmax.f32 %v415_v55, 1e-24  ;;  %v566_v26 = vmax.f32 %v412_v12, 1e-24  ;;  %v745_v19 = vpack.c.bf16 %v687_v8, %v686_v30  ;;  %2622 = vmatpush3.bf16.msra.mxu0 %v3712_v39 }
  0xd2   : > { %v2789_v18 = vpop.eup %2788  ;;  %v689_v63 = vmul.f32 %v2787_v28, %v3368_v34  ;;  %2623 = vmatprep.subr.bf16.mxu0 %v3723_v1 }
  0xd3   : > { %2798 = vrsqrt.f32 %v567_v45  ;;  %v688_v29 = vmul.f32 %v2789_v18, %v3371_v35 }
  0xd4   : > { %2800 = vrsqrt.f32 %v566_v26  ;;  %2560 = vmatmul.mubr.msk.bf16.gmra.mrb[8].mxu0 %vm355_vm0, %v745_v19  ;;  %v421_v57 = vpop.xlane.xlu1 %420  ;;  %v418_v16 = vpop.xlane.xlu0 %417 }
  0xd5   : > { %v2791_v38 = vpop.eup %2790  ;;  %v569_v56 = vmax.f32 %v421_v57, 1e-24  ;;  %v568_v4 = vmax.f32 %v418_v16, 1e-24  ;;  %v746_v44 = vpack.c.bf16 %v689_v63, %v688_v29  ;;  %2624 = vmatpush3.bf16.msra.mxu0 %v3723_v1 }
  0xd6   : > { %v2793_v39 = vpop.eup %2792  ;;  %v691_v34 = vmul.f32 %v2791_v38, %v3380_v40  ;;  %2625 = vmatprep.subr.bf16.mxu0 %v3736_v9 }
  0xd7   : > { %2802 = vrsqrt.f32 %v569_v56  ;;  %2563 = vmatprep.mubr.msk.bf16.mxu0 %vm355_vm0, %v746_v44  ;;  %v690_v35 = vmul.f32 %v2793_v39, %v3383_v41 }
  0xd8   : > { %2804 = vrsqrt.f32 %v568_v4  ;;  %v427_v0 = vpop.xlane.xlu1 %426  ;;  %v424_v2 = vpop.xlane.xlu0 %423 }
  0xd9   : > { %v2795_v31 = vpop.eup %2794  ;;  %v571_v3 = vmax.f32 %v427_v0, 1e-24  ;;  %v570_v22 = vmax.f32 %v424_v2, 1e-24  ;;  %v747_v13 = vpack.c.bf16 %v691_v34, %v690_v35  ;;  %2626 = vmatpush3.bf16.msra.mxu0 %v3736_v9 }
  0xda   : > { %v2797_v1 = vpop.eup %2796  ;;  %v693_v6 = vmul.f32 %v2795_v31, %v3392_v46  ;;  %2627 = vmatprep.subr.bf16.mxu0 %v3748_v17 }
  0xdb   : > { %2806 = vrsqrt.f32 %v571_v3  ;;  %v692_v40 = vmul.f32 %v2797_v1, %v3395_v47 }
  0xdc   : > { %2808 = vrsqrt.f32 %v570_v22  ;;  %2564 = vmatmul.mubr.msk.bf16.gmra.mrb[12].mxu0 %vm355_vm0, %v747_v13  ;;  %v433_v41 = vpop.xlane.xlu1 %432  ;;  %v430_v27 = vpop.xlane.xlu0 %429 }
  0xdd   : > { %v2799_v54 = vpop.eup %2798  ;;  %v573_v8 = vmax.f32 %v433_v41, 1e-24  ;;  %v572_v30 = vmax.f32 %v430_v27, 1e-24  ;;  %v748_v55 = vpack.c.bf16 %v693_v6, %v692_v40  ;;  %2628 = vmatpush3.bf16.msra.mxu0 %v3748_v17 }
  0xde   : > { %v2801_v9 = vpop.eup %2800  ;;  %v695_v12 = vmul.f32 %v2799_v54, %v3404_v52  ;;  %2629 = vmatprep.subr.bf16.mxu0 %v3760_v23 }
  0xdf   : > { %2810 = vrsqrt.f32 %v573_v8  ;;  %2567 = vmatprep.mubr.msk.bf16.mxu0 %vm355_vm0, %v748_v55  ;;  %v694_v46 = vmul.f32 %v2801_v9, %v3407_v53 }
  0xe0   : > { %2812 = vrsqrt.f32 %v572_v30  ;;  %v439_v47 = vpop.xlane.xlu1 %438  ;;  %v436_v28 = vpop.xlane.xlu0 %435 }
  0xe1   : > { %v2803_v45 = vpop.eup %2802  ;;  %v575_v26 = vmax.f32 %v439_v47, 1e-24  ;;  %v574_v19 = vmax.f32 %v436_v28, 1e-24  ;;  %v749_v18 = vpack.c.bf16 %v695_v12, %v694_v46  ;;  %2630 = vmatpush3.bf16.msra.mxu0 %v3760_v23 }
  0xe2   : > { %v2805_v17 = vpop.eup %2804  ;;  %v697_v63 = vmul.f32 %v2803_v45, %v3419_v59 }
  0xe3   : > { %2814 = vrsqrt.f32 %v575_v26  ;;  %v696_v52 = vmul.f32 %v2805_v17, %v3422_v60 }
  0xe4   : > { %2816 = vrsqrt.f32 %v574_v19  ;;  %2568 = vmatmul.mubr.msk.bf16.gmra.mrb[16].mxu0 %vm355_vm0, %v749_v18  ;;  %v445_v29 = vpop.xlane.xlu1 %444  ;;  %v442_v53 = vpop.xlane.xlu0 %441 }
  0xe5   : > { %v2807_v57 = vpop.eup %2806  ;;  %v577_v16 = vmax.f32 %v445_v29, 1e-24  ;;  %v576_v38 = vmax.f32 %v442_v53, 1e-24  ;;  %v750_v56 = vpack.c.bf16 %v697_v63, %v696_v52 }
  0xe6   : > { %v2809_v4 = vpop.eup %2808  ;;  %v699_v44 = vmul.f32 %v2807_v57, %v3434_v5 }
  0xe7   : > { %2818 = vrsqrt.f32 %v577_v16  ;;  %2571 = vmatprep.mubr.msk.bf16.mxu0 %vm355_vm0, %v750_v56  ;;  %v698_v59 = vmul.f32 %v2809_v4, %v3437_v7 }
  0xe8   : > { %2820 = vrsqrt.f32 %v576_v38  ;;  %v451_v23 = vpop.xlane.xlu1 %450  ;;  %v448_v60 = vpop.xlane.xlu0 %447 }
  0xe9   : > { %v2811_v39 = vpop.eup %2810  ;;  %v579_v34 = vmax.f32 %v451_v23, 1e-24  ;;  %v578_v35 = vmax.f32 %v448_v60, 1e-24  ;;  %v751_v0 = vpack.c.bf16 %v699_v44, %v698_v59 }
  0xea   : > { %v2813_v2 = vpop.eup %2812  ;;  %v701_v31 = vmul.f32 %v2811_v39, %v3446_v14 }
  0xeb   : > { %2822 = vrsqrt.f32 %v579_v34  ;;  %v700_v3 = vmul.f32 %v2813_v2, %v3449_v15 }
  0xec   : > { %2824 = vrsqrt.f32 %v578_v35  ;;  %2572 = vmatmul.mubr.msk.bf16.gmra.mrb[20].mxu0 %vm355_vm0, %v751_v0  ;;  %v457_v5 = vpop.xlane.xlu1 %456  ;;  %v454_v22 = vpop.xlane.xlu0 %453 }
  0xed   : > { %v2815_v13 = vpop.eup %2814  ;;  %v581_v7 = vmax.f32 %v457_v5, 1e-24  ;;  %v580_v1 = vmax.f32 %v454_v22, 1e-24  ;;  %v752_v6 = vpack.c.bf16 %v701_v31, %v700_v3 }
  0xee   : > { %v2817_v40 = vpop.eup %2816  ;;  %v703_v41 = vmul.f32 %v2815_v13, %v3458_v24 }
  0xef   : > { %2826 = vrsqrt.f32 %v581_v7  ;;  %2575 = vmatprep.mubr.msk.bf16.mxu0 %vm355_vm0, %v752_v6  ;;  %v702_v14 = vmul.f32 %v2817_v40, %v3461_v25 }
  0xf0   : > { %2828 = vrsqrt.f32 %v580_v1  ;;  %v463_v27 = vpop.xlane.xlu1 %462  ;;  %v460_v15 = vpop.xlane.xlu0 %459 }
  0xf1   : > { %v2819_v54 = vpop.eup %2818  ;;  %v583_v8 = vmax.f32 %v463_v27, 1e-24  ;;  %v582_v30 = vmax.f32 %v460_v15, 1e-24  ;;  %v753_v55 = vpack.c.bf16 %v703_v41, %v702_v14 }
  0xf2   : > { %v2821_v9 = vpop.eup %2820  ;;  %v705_v12 = vmul.f32 %v2819_v54, %v3470_v32 }
  0xf3   : > { %2830 = vrsqrt.f32 %v583_v8  ;;  %v704_v46 = vmul.f32 %v2821_v9, %v3473_v33 }
  0xf4   : > { %2832 = vrsqrt.f32 %v582_v30  ;;  %2576 = vmatmul.mubr.msk.bf16.gmra.mrb[24].mxu0 %vm355_vm0, %v753_v55  ;;  %v469_v24 = vpop.xlane.xlu1 %468  ;;  %v466_v47 = vpop.xlane.xlu0 %465 }
  0xf5   : > { %v2823_v28 = vpop.eup %2822  ;;  %v585_v25 = vmax.f32 %v469_v24, 1e-24  ;;  %v584_v45 = vmax.f32 %v466_v47, 1e-24  ;;  %v754_v26 = vpack.c.bf16 %v705_v12, %v704_v46 }
  0xf6   : > { %v2825_v19 = vpop.eup %2824  ;;  %v707_v18 = vmul.f32 %v2823_v28, %v3482_v42 }
  0xf7   : > { %2834 = vrsqrt.f32 %v585_v25  ;;  %2579 = vmatprep.mubr.msk.bf16.mxu0 %vm355_vm0, %v754_v26  ;;  %v706_v32 = vmul.f32 %v2825_v19, %v3485_v43 }
  0xf8   : > { %2836 = vrsqrt.f32 %v584_v45  ;;  %v475_v17 = vpop.xlane.xlu1 %474  ;;  %v472_v33 = vpop.xlane.xlu0 %471 }
  0xf9   : > { %v2827_v63 = vpop.eup %2826  ;;  %v587_v52 = vmax.f32 %v475_v17, 1e-24  ;;  %v586_v29 = vmax.f32 %v472_v33, 1e-24  ;;  %v755_v53 = vpack.c.bf16 %v707_v18, %v706_v32  ;;  %v4695_v33 = vld [vmem:[#allocation5_spill] sm:$0xff] }
  0xfa   : > { %v2829_v57 = vpop.eup %2828  ;;  %v709_v16 = vmul.f32 %v2827_v63, %v3494_v50 }
  0xfb   : > { %2838 = vrsqrt.f32 %v587_v52  ;;  %v708_v38 = vmul.f32 %v2829_v57, %v3497_v51 }
  0xfc   : > { %2840 = vrsqrt.f32 %v586_v29  ;;  %2580 = vmatmul.mubr.msk.bf16.gmra.mrb[28].mxu0 %vm355_vm0, %v755_v53  ;;  %v481_v42 = vpop.xlane.xlu1 %480  ;;  %v478_v56 = vpop.xlane.xlu0 %477 }
  0xfd   : > { %v2831_v4 = vpop.eup %2830  ;;  %v589_v43 = vmax.f32 %v481_v42, 1e-24  ;;  %v588_v44 = vmax.f32 %v478_v56, 1e-24  ;;  %v756_v59 = vpack.c.bf16 %v709_v16, %v708_v38  ;;  %v4696_v38 = vld [vmem:[#allocation6_spill] sm:$0xff]  ;;  %v4697_v56 = vld [vmem:[#allocation7_spill] sm:$0xff] }
  0xfe   : > { %v2833_v23 = vpop.eup %2832  ;;  %v711_v60 = vmul.f32 %v2831_v4, %v3506_v58 }
  0xff   : > { %2842 = vrsqrt.f32 %v589_v43  ;;  %2583 = vmatprep.mubr.msk.bf16.mxu0 %vm355_vm0, %v756_v59  ;;  %v710_v50 = vmul.f32 %v2833_v23, %v3509_v61 }
 0x100   : > { %2844 = vrsqrt.f32 %v588_v44  ;;  %v487_v39 = vpop.xlane.xlu1 %486  ;;  %v484_v51 = vpop.xlane.xlu0 %483 }
 0x101   : > { %v2835_v34 = vpop.eup %2834  ;;  %v591_v35 = vmax.f32 %v487_v39, 1e-24  ;;  %v590_v0 = vmax.f32 %v484_v51, 1e-24  ;;  %v757_v2 = vpack.c.bf16 %v711_v60, %v710_v50  ;;  %v4698_v39 = vld [vmem:[#allocation8_spill] sm:$0xff] }
 0x102   : > { %v2837_v31 = vpop.eup %2836  ;;  %v713_v3 = vmul.f32 %v2835_v34, %v3518_v10  ;;  %v4699_v34 = vld [vmem:[#allocation9_spill] sm:$0xff] }
 0x103   : > { %2846 = vrsqrt.f32 %v591_v35  ;;  %v712_v5 = vmul.f32 %v2837_v31, %v3521_v11 }
 0x104   : > { %2848 = vrsqrt.f32 %v590_v0  ;;  %2584 = vmatmul.mubr.msk.bf16.gmra.mrb[32].mxu0 %vm355_vm0, %v757_v2  ;;  %v493_v58 = vpop.xlane.xlu1 %492  ;;  %v490_v22 = vpop.xlane.xlu0 %489 }
 0x105   : > { %v2839_v13 = vpop.eup %2838  ;;  %v593_v61 = vmax.f32 %v493_v58, 1e-24  ;;  %v592_v7 = vmax.f32 %v490_v22, 1e-24  ;;  %v758_v1 = vpack.c.bf16 %v713_v3, %v712_v5 }
 0x106   : > { %v2841_v6 = vpop.eup %2840  ;;  %v715_v40 = vmul.f32 %v2839_v13, %v3530_v20  ;;  %v4700_v13 = vld [vmem:[#allocation10_spill] sm:$0xff] }
 0x107   : > { %2850 = vrsqrt.f32 %v593_v61  ;;  %2587 = vmatprep.mubr.msk.bf16.mxu0 %vm355_vm0, %v758_v1  ;;  %v714_v10 = vmul.f32 %v2841_v6, %v3533_v21 }
 0x108   : > { %2852 = vrsqrt.f32 %v592_v7  ;;  %v499_v41 = vpop.xlane.xlu1 %498  ;;  %v496_v11 = vpop.xlane.xlu0 %495  ;;  %v4701_v7 = vld [vmem:[#allocation11_spill] sm:$0xff] }
 0x109   : > { %v2843_v14 = vpop.eup %2842  ;;  %v595_v27 = vmax.f32 %v499_v41, 1e-24  ;;  %v594_v15 = vmax.f32 %v496_v11, 1e-24  ;;  %v759_v54 = vpack.c.bf16 %v715_v40, %v714_v10 }
 0x10a   : > { %v2845_v8 = vpop.eup %2844  ;;  %v717_v30 = vmul.f32 %v2843_v14, %v3542_v36 }
 0x10b   : > { %2854 = vrsqrt.f32 %v595_v27  ;;  %v716_v55 = vmul.f32 %v2845_v8, %v3545_v37  ;;  %v4703_v8 = vld [vmem:[#allocation13_spill] sm:$0xff] }
 0x10c   : > { %2856 = vrsqrt.f32 %v594_v15  ;;  %2588 = vmatmul.mubr.msk.bf16.gmra.mrb[36].mxu0 %vm355_vm0, %v759_v54  ;;  %v505_v20 = vpop.xlane.xlu1 %504  ;;  %v502_v9 = vpop.xlane.xlu0 %501  ;;  %v4702_v15 = vld [vmem:[#allocation12_spill] sm:$0xff] }
 0x10d   : > { %v2847_v12 = vpop.eup %2846  ;;  %v597_v21 = vmax.f32 %v505_v20, 1e-24  ;;  %v596_v46 = vmax.f32 %v502_v9, 1e-24  ;;  %v760_v24 = vpack.c.bf16 %v717_v30, %v716_v55 }
 0x10e   : > { %v2849_v47 = vpop.eup %2848  ;;  %v719_v28 = vmul.f32 %v2847_v12, %v3554_v48 }
 0x10f   : > { %2858 = vrsqrt.f32 %v597_v21  ;;  %2591 = vmatprep.mubr.msk.bf16.mxu0 %vm355_vm0, %v760_v24  ;;  %v718_v36 = vmul.f32 %v2849_v47, %v3557_v49  ;;  %v4704_v47 = vld [vmem:[#allocation14_spill] sm:$0xff] }
 0x110   : > { %2860 = vrsqrt.f32 %v596_v46  ;;  %v511_v25 = vpop.xlane.xlu1 %510  ;;  %v508_v37 = vpop.xlane.xlu0 %507 }
 0x111   : > { %v2851_v45 = vpop.eup %2850  ;;  %v599_v26 = vmax.f32 %v511_v25, 1e-24  ;;  %v598_v19 = vmax.f32 %v508_v37, 1e-24  ;;  %v761_v18 = vpack.c.bf16 %v719_v28, %v718_v36  ;;  %v4705_v36 = vld [vmem:[#allocation15_spill] sm:$0xff] }
 0x112   : > { %v2853_v32 = vpop.eup %2852  ;;  %v721_v17 = vmul.f32 %v2851_v45, %v3566_v62 }
 0x113   : > { %2862 = vrsqrt.f32 %v599_v26  ;;  %v720_v63 = vmul.f32 %v2853_v32, %v4695_v33  ;;  %v4706_v33 = vld [vmem:[#allocation16_spill] sm:$0xff] }
 0x114   : > { %2864 = vrsqrt.f32 %v598_v19  ;;  %2592 = vmatmul.mubr.msk.bf16.gmra.mrb[40].mxu0 %vm355_vm0, %v761_v18  ;;  %v517_v48 = vpop.xlane.xlu1 %516  ;;  %v514_v52 = vpop.xlane.xlu0 %513 }
 0x115   : > { %v2855_v29 = vpop.eup %2854  ;;  %v601_v49 = vmax.f32 %v517_v48, 1e-24  ;;  %v600_v53 = vmax.f32 %v514_v52, 1e-24  ;;  %v762_v57 = vpack.c.bf16 %v721_v17, %v720_v63  ;;  %v4707_v48 = vld [vmem:[#allocation17_spill] sm:$0xff] }
 0x116   : > { %v2857_v16 = vpop.eup %2856  ;;  %v723_v42 = vmul.f32 %v2855_v29, %v4696_v38  ;;  %v4709_v38 = vld [vmem:[#allocation19_spill] sm:$0xff] }
 0x117   : > { %2866 = vrsqrt.f32 %v601_v49  ;;  %2595 = vmatprep.mubr.msk.bf16.mxu0 %vm355_vm0, %v762_v57  ;;  %v722_v62 = vmul.f32 %v2857_v16, %v4697_v56  ;;  %v4708_v57 = vld [vmem:[#allocation18_spill] sm:$0xff] }
 0x118   : > { %2868 = vrsqrt.f32 %v600_v53  ;;  %v523_v4 = vpop.xlane.xlu1 %522  ;;  %v520_v43 = vpop.xlane.xlu0 %519 }
 0x119   : > { %v2859_v44 = vpop.eup %2858  ;;  %v603_v59 = vmax.f32 %v523_v4, 1e-24  ;;  %v602_v23 = vmax.f32 %v520_v43, 1e-24  ;;  %v763_v60 = vpack.c.bf16 %v723_v42, %v722_v62  ;;  %v4710_v43 = vld [vmem:[#allocation20_spill] sm:$0xff] }
 0x11a   : > { %v2861_v50 = vpop.eup %2860  ;;  %v725_v51 = vmul.f32 %v2859_v44, %v4698_v39 }
 0x11b   : > { %2870 = vrsqrt.f32 %v603_v59  ;;  %v724_v35 = vmul.f32 %v2861_v50, %v4699_v34  ;;  %v4711_v59 = vld [vmem:[#allocation21_spill] sm:$0xff] }
 0x11c   : > { %2872 = vrsqrt.f32 %v602_v23  ;;  %2596 = vmatmul.mubr.msk.bf16.gmra.mrb[44].mxu0 %vm355_vm0, %v763_v60  ;;  %v529_v0 = vpop.xlane.xlu1 %528  ;;  %v526_v2 = vpop.xlane.xlu0 %525 }
 0x11d   : > { %v2863_v31 = vpop.eup %2862  ;;  %v605_v3 = vmax.f32 %v529_v0, 1e-24  ;;  %v604_v5 = vmax.f32 %v526_v2, 1e-24  ;;  %v764_v58 = vpack.c.bf16 %v725_v51, %v724_v35  ;;  %v4712_v51 = vld [vmem:[#allocation22_spill] sm:$0xff]  ;;  %v4713_v35 = vld [vmem:[#allocation23_spill] sm:$0xff] }
 0x11e   : > { %v2865_v22 = vpop.eup %2864  ;;  %v727_v61 = vmul.f32 %v2863_v31, %v4700_v13  ;;  %v3858_v31 = vld [vmem:[%s4628_s2] ss:$0 sm:$0xff] }
 0x11f   : > { %2874 = vrsqrt.f32 %v605_v3  ;;  %2599 = vmatprep.mubr.msk.bf16.mxu0 %vm355_vm0, %v764_v58  ;;  %v726_v1 = vmul.f32 %v2865_v22, %v4701_v7 }
 0x120   : > { %2876 = vrsqrt.f32 %v604_v5  ;;  %v535_v6 = vpop.xlane.xlu1 %534  ;;  %v532_v40 = vpop.xlane.xlu0 %531 }
 0x121   : > { %v2867_v10 = vpop.eup %2866  ;;  %v607_v41 = vmax.f32 %v535_v6, 1e-24  ;;  %v606_v11 = vmax.f32 %v532_v40, 1e-24  ;;  %v765_v14 = vpack.c.bf16 %v727_v61, %v726_v1 }
 0x122   : > { %v2869_v27 = vpop.eup %2868  ;;  %v729_v54 = vmul.f32 %v2867_v10, %v4702_v15 }
 0x123   : > { %2878 = vrsqrt.f32 %v607_v41  ;;  %v728_v30 = vmul.f32 %v2869_v27, %v4703_v8 }
 0x124   : > { %2880 = vrsqrt.f32 %v606_v11  ;;  %2600 = vmatmul.mubr.msk.bf16.gmra.mrb[48].mxu0 %vm355_vm0, %v765_v14  ;;  %v541_v55 = vpop.xlane.xlu1 %540  ;;  %v538_v20 = vpop.xlane.xlu0 %537 }
 0x125   : > { %v2871_v9 = vpop.eup %2870  ;;  %v609_v12 = vmax.f32 %v541_v55, 1e-24  ;;  %v608_v21 = vmax.f32 %v538_v20, 1e-24  ;;  %v766_v46 = vpack.c.bf16 %v729_v54, %v728_v30 }
 0x126   : > { %v2873_v24 = vpop.eup %2872  ;;  %v731_v28 = vmul.f32 %v2871_v9, %v4704_v47 }
 0x127   : > { %2882 = vrsqrt.f32 %v609_v12  ;;  %2603 = vmatprep.mubr.msk.bf16.mxu0 %vm355_vm0, %v766_v46  ;;  %v730_v25 = vmul.f32 %v2873_v24, %v4705_v36 }
 0x128   : > { %2884 = vrsqrt.f32 %v608_v21  ;;  %v547_v37 = vpop.xlane.xlu1 %546  ;;  %v544_v45 = vpop.xlane.xlu0 %543 }
 0x129   : > { %v2875_v26 = vpop.eup %2874  ;;  %v611_v19 = vmax.f32 %v547_v37, 1e-24  ;;  %v610_v18 = vmax.f32 %v544_v45, 1e-24  ;;  %v767_v32 = vpack.c.bf16 %v731_v28, %v730_v25 }
 0x12a   : > { %v2877_v17 = vpop.eup %2876  ;;  %v733_v63 = vmul.f32 %v2875_v26, %v4706_v33 }
 0x12b   : > { %2886 = vrsqrt.f32 %v611_v19  ;;  %v732_v52 = vmul.f32 %v2877_v17, %v4707_v48 }
 0x12c   : > { %2888 = vrsqrt.f32 %v610_v18  ;;  %2604 = vmatmul.mubr.msk.bf16.gmra.mrb[52].mxu0 %vm355_vm0, %v767_v32 }
 0x12d   : > { %v2879_v29 = vpop.eup %2878  ;;  %v768_v49 = vpack.c.bf16 %v733_v63, %v732_v52 }
 0x12e   : > { %v2881_v53 = vpop.eup %2880  ;;  %v735_v16 = vmul.f32 %v2879_v29, %v4708_v57 }
 0x12f   : > { %2607 = vmatprep.mubr.msk.bf16.mxu0 %vm355_vm0, %v768_v49  ;;  %v734_v42 = vmul.f32 %v2881_v53, %v4709_v38 }
 0x131   : > { %v2883_v56 = vpop.eup %2882  ;;  %v769_v62 = vpack.c.bf16 %v735_v16, %v734_v42 }
 0x132   : > { %v2885_v4 = vpop.eup %2884  ;;  %v737_v44 = vmul.f32 %v2883_v56, %v4710_v43 }
 0x133   : > { %v736_v23 = vmul.f32 %v2885_v4, %v4711_v59 }
 0x134   : > { %2608 = vmatmul.mubr.msk.bf16.gmra.mrb[56].mxu0 %vm355_vm0, %v769_v62 }
 0x135   : > { %v2887_v60 = vpop.eup %2886  ;;  %v770_v50 = vpack.c.bf16 %v737_v44, %v736_v23 }
 0x136   : > { %v2889_v39 = vpop.eup %2888  ;;  %v739_v34 = vmul.f32 %v2887_v60, %v4712_v51 }
 0x137   : > { %2611 = vmatprep.mubr.msk.bf16.mxu0 %vm355_vm0, %v770_v50  ;;  %v738_v0 = vmul.f32 %v2889_v39, %v4713_v35 }
 0x139   : > { %v771_v2 = vpack.c.bf16 %v739_v34, %v738_v0 }
 0x13c   : > { %2612 = vmatmul.mubr.msk.bf16.gmra.mrb[60].mxu0 %vm355_vm0, %v771_v2 }
 0x197   : > { %v2553_v3 = vpop.f32.mrb[0].mxu0 }
 0x198   : > { %v934_v5 = vadd.f32 %v2553_v3, %v3858_v31  ;;  %v925_v58 = vpop.f32.mrb[1].mxu0 }
 0x199   : > { %v926_v22 = vadd.f32 %v3858_v31, %v925_v58  ;;  %v2554_v13 = vpop.f32.mrb[2].mxu0 }
 0x19a   : > { %v937_v61 = vadd.f32 %v2554_v13, %v3858_v31  ;;  %v928_v7 = vpop.f32.mrb[3].mxu0  ;;  %v1182_v6 = vmax.f32 %v934_v5, 0.0 }
 0x19b   : > { %v929_v1 = vadd.f32 %v3858_v31, %v928_v7  ;;  %v1180_v10 = vmax.f32 %v926_v22, 0.0 }
 0x19c   : > { %v1183_v40 = vmax.f32 %v937_v61, 0.0 }
 0x19d   : > { %v1181_v41 = vmax.f32 %v929_v1, 0.0 }
 0x19e   : > { %v1245_v11 = vpack.c.bf16 %v1183_v40, %v1182_v6 }
 0x19f   : > { %v1244_v14 = vpack.c.bf16 %v1181_v41, %v1180_v10  ;;  %v2557_v27 = vpop.f32.mrb[4].mxu0 }
 0x1a0   : > { %v950_v15 = vadd.f32 %v2557_v27, %v3858_v31  ;;  %v941_v54 = vpop.f32.mrb[5].mxu0 }
 0x1a1   : > { %v942_v8 = vadd.f32 %v3858_v31, %v941_v54  ;;  %v2558_v30 = vpop.f32.mrb[6].mxu0  ;;  %2631 = vmatprep.mubr.bf16.mxu0 %v1244_v14 }
 0x1a2   : > { %v953_v55 = vadd.f32 %v2558_v30, %v3858_v31  ;;  %v944_v20 = vpop.f32.mrb[7].mxu0  ;;  %2632 = vmatmul.mubr.bf16.vlgmr.msra.gmra.mrb[64].mxu0 %v1245_v11  ;;  %v1186_v12 = vmax.f32 %v950_v15, 0.0 }
 0x1a3   : > { %v945_v9 = vadd.f32 %v3858_v31, %v944_v20  ;;  %v1184_v46 = vmax.f32 %v942_v8, 0.0 }
 0x1a4   : > { %v1187_v21 = vmax.f32 %v953_v55, 0.0 }
 0x1a5   : > { %v1185_v24 = vmax.f32 %v945_v9, 0.0 }
 0x1a6   : > { %v1247_v47 = vpack.c.bf16 %v1187_v21, %v1186_v12 }
 0x1a7   : > { %v2561_v28 = vpop.f32.mrb[8].mxu0  ;;  %v1246_v36 = vpack.c.bf16 %v1185_v24, %v1184_v46 }
 0x1a8   : > { %v966_v25 = vadd.f32 %v2561_v28, %v3858_v31  ;;  %v957_v37 = vpop.f32.mrb[9].mxu0 }
 0x1a9   : > { %v958_v45 = vadd.f32 %v3858_v31, %v957_v37  ;;  %v2562_v26 = vpop.f32.mrb[10].mxu0  ;;  %2635 = vmatprep.mubr.bf16.mxu1 %v1246_v36 }
 0x1aa   : > { %v969_v19 = vadd.f32 %v2562_v26, %v3858_v31  ;;  %v960_v18 = vpop.f32.mrb[11].mxu0  ;;  %2636 = vmatmul.mubr.bf16.vlgmr.msra.gmra.mrb[0].mxu1 %v1247_v47  ;;  %v1190_v17 = vmax.f32 %v966_v25, 0.0 }
 0x1ab   : > { %v961_v32 = vadd.f32 %v3858_v31, %v960_v18  ;;  %v1188_v63 = vmax.f32 %v958_v45, 0.0 }
 0x1ac   : > { %v1191_v33 = vmax.f32 %v969_v19, 0.0 }
 0x1ad   : > { %v1189_v48 = vmax.f32 %v961_v32, 0.0 }
 0x1ae   : > { %v1249_v52 = vpack.c.bf16 %v1191_v33, %v1190_v17 }
 0x1af   : > { %v1248_v29 = vpack.c.bf16 %v1189_v48, %v1188_v63  ;;  %v2565_v49 = vpop.f32.mrb[12].mxu0 }
 0x1b0   : > { %v982_v53 = vadd.f32 %v2565_v49, %v3858_v31  ;;  %v973_v57 = vpop.f32.mrb[13].mxu0 }
 0x1b1   : > { %v974_v16 = vadd.f32 %v3858_v31, %v973_v57  ;;  %v2566_v38 = vpop.f32.mrb[14].mxu0  ;;  %2639 = vmatprep.mubr.bf16.mxu1 %v1248_v29 }
 0x1b2   : > { %v985_v42 = vadd.f32 %v2566_v38, %v3858_v31  ;;  %v976_v56 = vpop.f32.mrb[15].mxu0  ;;  %2640 = vmatmul.mubr.bf16.gmra.mrb[4].mxu1 %v1249_v52  ;;  %v1194_v4 = vmax.f32 %v982_v53, 0.0 }
 0x1b3   : > { %v977_v62 = vadd.f32 %v3858_v31, %v976_v56  ;;  %v1192_v44 = vmax.f32 %v974_v16, 0.0 }
 0x1b4   : > { %v1195_v43 = vmax.f32 %v985_v42, 0.0 }
 0x1b5   : > { %v1193_v59 = vmax.f32 %v977_v62, 0.0 }
 0x1b6   : > { %v1251_v23 = vpack.c.bf16 %v1195_v43, %v1194_v4 }
 0x1b7   : > { %v1250_v60 = vpack.c.bf16 %v1193_v59, %v1192_v44  ;;  %v2569_v50 = vpop.f32.mrb[16].mxu0 }
 0x1b8   : > { %v998_v39 = vadd.f32 %v2569_v50, %v3858_v31  ;;  %v989_v51 = vpop.f32.mrb[17].mxu0 }
 0x1b9   : > { %v990_v34 = vadd.f32 %v3858_v31, %v989_v51  ;;  %v2570_v35 = vpop.f32.mrb[18].mxu0  ;;  %2643 = vmatprep.mubr.bf16.mxu1 %v1250_v60 }
 0x1ba   : > { %v1001_v0 = vadd.f32 %v2570_v35, %v3858_v31  ;;  %v992_v2 = vpop.f32.mrb[19].mxu0  ;;  %2644 = vmatmul.mubr.bf16.gmra.mrb[8].mxu1 %v1251_v23  ;;  %v1198_v5 = vmax.f32 %v998_v39, 0.0 }
 0x1bb   : > { %v993_v3 = vadd.f32 %v3858_v31, %v992_v2  ;;  %v1196_v22 = vmax.f32 %v990_v34, 0.0 }
 0x1bc   : > { %v1199_v58 = vmax.f32 %v1001_v0, 0.0 }
 0x1bd   : > { %v1197_v13 = vmax.f32 %v993_v3, 0.0 }
 0x1be   : > { %v1253_v61 = vpack.c.bf16 %v1199_v58, %v1198_v5 }
 0x1bf   : > { %v1252_v7 = vpack.c.bf16 %v1197_v13, %v1196_v22  ;;  %v2573_v1 = vpop.f32.mrb[20].mxu0 }
 0x1c0   : > { %v1014_v6 = vadd.f32 %v2573_v1, %v3858_v31  ;;  %v1005_v40 = vpop.f32.mrb[21].mxu0 }
 0x1c1   : > { %v1006_v10 = vadd.f32 %v3858_v31, %v1005_v40  ;;  %v2574_v41 = vpop.f32.mrb[22].mxu0  ;;  %2647 = vmatprep.mubr.bf16.mxu1 %v1252_v7 }
 0x1c2   : > { %v1017_v11 = vadd.f32 %v2574_v41, %v3858_v31  ;;  %v1008_v14 = vpop.f32.mrb[23].mxu0  ;;  %2648 = vmatmul.mubr.bf16.gmra.mrb[12].mxu1 %v1253_v61  ;;  %v1202_v15 = vmax.f32 %v1014_v6, 0.0 }
 0x1c3   : > { %v1009_v27 = vadd.f32 %v3858_v31, %v1008_v14  ;;  %v1200_v8 = vmax.f32 %v1006_v10, 0.0 }
 0x1c4   : > { %v1203_v54 = vmax.f32 %v1017_v11, 0.0 }
 0x1c5   : > { %v1201_v30 = vmax.f32 %v1009_v27, 0.0 }
 0x1c6   : > { %v1255_v55 = vpack.c.bf16 %v1203_v54, %v1202_v15 }
 0x1c7   : > { %v1254_v20 = vpack.c.bf16 %v1201_v30, %v1200_v8  ;;  %v2577_v9 = vpop.f32.mrb[24].mxu0 }
 0x1c8   : > { %v1030_v12 = vadd.f32 %v2577_v9, %v3858_v31  ;;  %v1021_v21 = vpop.f32.mrb[25].mxu0 }
 0x1c9   : > { %v1022_v46 = vadd.f32 %v3858_v31, %v1021_v21  ;;  %v2578_v24 = vpop.f32.mrb[26].mxu0  ;;  %2651 = vmatprep.mubr.bf16.mxu1 %v1254_v20 }
 0x1ca   : > { %v1033_v47 = vadd.f32 %v2578_v24, %v3858_v31  ;;  %v1024_v28 = vpop.f32.mrb[27].mxu0  ;;  %2652 = vmatmul.mubr.bf16.gmra.mrb[16].mxu1 %v1255_v55  ;;  %v1206_v25 = vmax.f32 %v1030_v12, 0.0 }
 0x1cb   : > { %v1025_v36 = vadd.f32 %v3858_v31, %v1024_v28  ;;  %v1204_v45 = vmax.f32 %v1022_v46, 0.0 }
 0x1cc   : > { %v1207_v37 = vmax.f32 %v1033_v47, 0.0 }
 0x1cd   : > { %v1205_v26 = vmax.f32 %v1025_v36, 0.0 }
 0x1ce   : > { %v1257_v19 = vpack.c.bf16 %v1207_v37, %v1206_v25 }
 0x1cf   : > { %v1256_v18 = vpack.c.bf16 %v1205_v26, %v1204_v45  ;;  %v2581_v32 = vpop.f32.mrb[28].mxu0 }
 0x1d0   : > { %v1046_v17 = vadd.f32 %v2581_v32, %v3858_v31  ;;  %v1037_v33 = vpop.f32.mrb[29].mxu0 }
 0x1d1   : > { %v1038_v63 = vadd.f32 %v3858_v31, %v1037_v33  ;;  %v2582_v48 = vpop.f32.mrb[30].mxu0  ;;  %2655 = vmatprep.mubr.bf16.mxu1 %v1256_v18 }
 0x1d2   : > { %v1049_v52 = vadd.f32 %v2582_v48, %v3858_v31  ;;  %v1040_v29 = vpop.f32.mrb[31].mxu0  ;;  %2656 = vmatmul.mubr.bf16.gmra.mrb[20].mxu1 %v1257_v19  ;;  %v1210_v53 = vmax.f32 %v1046_v17, 0.0 }
 0x1d3   : > { %v1041_v49 = vadd.f32 %v3858_v31, %v1040_v29  ;;  %v1208_v16 = vmax.f32 %v1038_v63, 0.0 }
 0x1d4   : > { %v1211_v57 = vmax.f32 %v1049_v52, 0.0 }
 0x1d5   : > { %v1209_v38 = vmax.f32 %v1041_v49, 0.0 }
 0x1d6   : > { %v1259_v42 = vpack.c.bf16 %v1211_v57, %v1210_v53 }
 0x1d7   : > { %v1258_v56 = vpack.c.bf16 %v1209_v38, %v1208_v16  ;;  %v2585_v62 = vpop.f32.mrb[32].mxu0 }
 0x1d8   : > { %v1062_v4 = vadd.f32 %v2585_v62, %v3858_v31  ;;  %v1053_v43 = vpop.f32.mrb[33].mxu0 }
 0x1d9   : > { %v1054_v44 = vadd.f32 %v3858_v31, %v1053_v43  ;;  %v2586_v59 = vpop.f32.mrb[34].mxu0  ;;  %2659 = vmatprep.mubr.bf16.mxu1 %v1258_v56 }
 0x1da   : > { %v1065_v23 = vadd.f32 %v2586_v59, %v3858_v31  ;;  %v1056_v60 = vpop.f32.mrb[35].mxu0  ;;  %2660 = vmatmul.mubr.bf16.gmra.mrb[24].mxu1 %v1259_v42  ;;  %v1214_v39 = vmax.f32 %v1062_v4, 0.0 }
 0x1db   : > { %v1057_v50 = vadd.f32 %v3858_v31, %v1056_v60  ;;  %v1212_v34 = vmax.f32 %v1054_v44, 0.0 }
 0x1dc   : > { %v1215_v51 = vmax.f32 %v1065_v23, 0.0 }
 0x1dd   : > { %v1213_v35 = vmax.f32 %v1057_v50, 0.0 }
 0x1de   : > { %v1261_v0 = vpack.c.bf16 %v1215_v51, %v1214_v39 }
 0x1df   : > { %v1260_v2 = vpack.c.bf16 %v1213_v35, %v1212_v34  ;;  %v2589_v3 = vpop.f32.mrb[36].mxu0 }
 0x1e0   : > { %v1078_v5 = vadd.f32 %v2589_v3, %v3858_v31  ;;  %v1069_v58 = vpop.f32.mrb[37].mxu0 }
 0x1e1   : > { %v1070_v22 = vadd.f32 %v3858_v31, %v1069_v58  ;;  %v2590_v13 = vpop.f32.mrb[38].mxu0  ;;  %2663 = vmatprep.mubr.bf16.mxu1 %v1260_v2 }
 0x1e2   : > { %v1081_v61 = vadd.f32 %v2590_v13, %v3858_v31  ;;  %v1072_v7 = vpop.f32.mrb[39].mxu0  ;;  %2664 = vmatmul.mubr.bf16.gmra.mrb[28].mxu1 %v1261_v0  ;;  %v1218_v6 = vmax.f32 %v1078_v5, 0.0 }
 0x1e3   : > { %v1073_v1 = vadd.f32 %v3858_v31, %v1072_v7  ;;  %v1216_v10 = vmax.f32 %v1070_v22, 0.0 }
 0x1e4   : > { %v1219_v40 = vmax.f32 %v1081_v61, 0.0 }
 0x1e5   : > { %v1217_v41 = vmax.f32 %v1073_v1, 0.0 }
 0x1e6   : > { %v1263_v11 = vpack.c.bf16 %v1219_v40, %v1218_v6 }
 0x1e7   : > { %v1262_v14 = vpack.c.bf16 %v1217_v41, %v1216_v10  ;;  %v2593_v27 = vpop.f32.mrb[40].mxu0 }
 0x1e8   : > { %v1094_v15 = vadd.f32 %v2593_v27, %v3858_v31  ;;  %v1085_v54 = vpop.f32.mrb[41].mxu0 }
 0x1e9   : > { %v1086_v8 = vadd.f32 %v3858_v31, %v1085_v54  ;;  %v2594_v30 = vpop.f32.mrb[42].mxu0  ;;  %2667 = vmatprep.mubr.bf16.mxu1 %v1262_v14 }
 0x1ea   : > { %v1097_v55 = vadd.f32 %v2594_v30, %v3858_v31  ;;  %v1088_v20 = vpop.f32.mrb[43].mxu0  ;;  %2668 = vmatmul.mubr.bf16.gmra.mrb[32].mxu1 %v1263_v11  ;;  %v1222_v12 = vmax.f32 %v1094_v15, 0.0 }
 0x1eb   : > { %v1089_v9 = vadd.f32 %v3858_v31, %v1088_v20  ;;  %v1220_v46 = vmax.f32 %v1086_v8, 0.0 }
 0x1ec   : > { %v1223_v21 = vmax.f32 %v1097_v55, 0.0 }
 0x1ed   : > { %v1221_v24 = vmax.f32 %v1089_v9, 0.0 }
 0x1ee   : > { %v1265_v47 = vpack.c.bf16 %v1223_v21, %v1222_v12 }
 0x1ef   : > { %v1264_v28 = vpack.c.bf16 %v1221_v24, %v1220_v46  ;;  %v2597_v36 = vpop.f32.mrb[44].mxu0 }
 0x1f0   : > { %v1110_v25 = vadd.f32 %v2597_v36, %v3858_v31  ;;  %v1101_v37 = vpop.f32.mrb[45].mxu0 }
 0x1f1   : > { %v1102_v45 = vadd.f32 %v3858_v31, %v1101_v37  ;;  %v2598_v26 = vpop.f32.mrb[46].mxu0  ;;  %2671 = vmatprep.mubr.bf16.mxu1 %v1264_v28 }
 0x1f2   : > { %v1113_v19 = vadd.f32 %v2598_v26, %v3858_v31  ;;  %v1104_v18 = vpop.f32.mrb[47].mxu0  ;;  %2672 = vmatmul.mubr.bf16.gmra.mrb[36].mxu1 %v1265_v47  ;;  %v1226_v17 = vmax.f32 %v1110_v25, 0.0 }
 0x1f3   : > { %v1105_v32 = vadd.f32 %v3858_v31, %v1104_v18  ;;  %v1224_v63 = vmax.f32 %v1102_v45, 0.0 }
 0x1f4   : > { %v1227_v33 = vmax.f32 %v1113_v19, 0.0 }
 0x1f5   : > { %v1225_v48 = vmax.f32 %v1105_v32, 0.0  ;;  %v3927_v32 = vld [vmem:[%s4630_s4] ss:$0 sm:$0xff] }
 0x1f6   : > { %v1267_v52 = vpack.c.bf16 %v1227_v33, %v1226_v17 }
 0x1f7   : > { %v1266_v29 = vpack.c.bf16 %v1225_v48, %v1224_v63  ;;  %v2601_v49 = vpop.f32.mrb[48].mxu0 }
 0x1f8   : > { %v1126_v53 = vadd.f32 %v2601_v49, %v3858_v31  ;;  %v1117_v57 = vpop.f32.mrb[49].mxu0 }
 0x1f9   : > { %v1118_v16 = vadd.f32 %v3858_v31, %v1117_v57  ;;  %v2602_v38 = vpop.f32.mrb[50].mxu0  ;;  %2675 = vmatprep.mubr.bf16.mxu1 %v1266_v29 }
 0x1fa   : > { %v1129_v42 = vadd.f32 %v2602_v38, %v3858_v31  ;;  %v1120_v56 = vpop.f32.mrb[51].mxu0  ;;  %2676 = vmatmul.mubr.bf16.gmra.mrb[40].mxu1 %v1267_v52  ;;  %v1230_v4 = vmax.f32 %v1126_v53, 0.0 }
 0x1fb   : > { %v1121_v62 = vadd.f32 %v3858_v31, %v1120_v56  ;;  %v1228_v44 = vmax.f32 %v1118_v16, 0.0 }
 0x1fc   : > { %v1231_v43 = vmax.f32 %v1129_v42, 0.0 }
 0x1fd   : > { %v1229_v59 = vmax.f32 %v1121_v62, 0.0 }
 0x1fe   : > { %v1269_v23 = vpack.c.bf16 %v1231_v43, %v1230_v4 }
 0x1ff   : > { %v1268_v60 = vpack.c.bf16 %v1229_v59, %v1228_v44  ;;  %v2605_v50 = vpop.f32.mrb[52].mxu0 }
 0x200   : > { %v1142_v39 = vadd.f32 %v2605_v50, %v3858_v31  ;;  %v1133_v51 = vpop.f32.mrb[53].mxu0 }
 0x201   : > { %v1134_v34 = vadd.f32 %v3858_v31, %v1133_v51  ;;  %v2606_v35 = vpop.f32.mrb[54].mxu0  ;;  %2679 = vmatprep.mubr.bf16.mxu1 %v1268_v60 }
 0x202   : > { %v1145_v0 = vadd.f32 %v2606_v35, %v3858_v31  ;;  %v1136_v2 = vpop.f32.mrb[55].mxu0  ;;  %2680 = vmatmul.mubr.bf16.gmra.mrb[44].mxu1 %v1269_v23  ;;  %v1234_v5 = vmax.f32 %v1142_v39, 0.0 }
 0x203   : > { %v1137_v3 = vadd.f32 %v3858_v31, %v1136_v2  ;;  %v1232_v22 = vmax.f32 %v1134_v34, 0.0 }
 0x204   : > { %v1235_v58 = vmax.f32 %v1145_v0, 0.0 }
 0x205   : > { %v1233_v13 = vmax.f32 %v1137_v3, 0.0 }
 0x206   : > { %v1271_v61 = vpack.c.bf16 %v1235_v58, %v1234_v5 }
 0x207   : > { %v1270_v7 = vpack.c.bf16 %v1233_v13, %v1232_v22  ;;  %v2609_v1 = vpop.f32.mrb[56].mxu0 }
 0x208   : > { %v1158_v6 = vadd.f32 %v2609_v1, %v3858_v31  ;;  %v1149_v40 = vpop.f32.mrb[57].mxu0 }
 0x209   : > { %v1150_v10 = vadd.f32 %v3858_v31, %v1149_v40  ;;  %v2610_v41 = vpop.f32.mrb[58].mxu0  ;;  %2683 = vmatprep.mubr.bf16.mxu1 %v1270_v7 }
 0x20a   : > { %v1161_v11 = vadd.f32 %v2610_v41, %v3858_v31  ;;  %v1152_v14 = vpop.f32.mrb[59].mxu0  ;;  %2684 = vmatmul.mubr.bf16.gmra.mrb[48].mxu1 %v1271_v61  ;;  %v1238_v15 = vmax.f32 %v1158_v6, 0.0 }
 0x20b   : > { %v1153_v27 = vadd.f32 %v3858_v31, %v1152_v14  ;;  %v1236_v8 = vmax.f32 %v1150_v10, 0.0 }
 0x20c   : > { %v1239_v54 = vmax.f32 %v1161_v11, 0.0 }
 0x20d   : > { %v1237_v30 = vmax.f32 %v1153_v27, 0.0 }
 0x20e   : > { %v1273_v55 = vpack.c.bf16 %v1239_v54, %v1238_v15 }
 0x20f   : > { %v1272_v20 = vpack.c.bf16 %v1237_v30, %v1236_v8  ;;  %v2613_v9 = vpop.f32.mrb[60].mxu0 }
 0x210   : > { %v1174_v12 = vadd.f32 %v2613_v9, %v3858_v31  ;;  %v1165_v21 = vpop.f32.mrb[61].mxu0 }
 0x211   : > { %v1166_v46 = vadd.f32 %v3858_v31, %v1165_v21  ;;  %v2614_v24 = vpop.f32.mrb[62].mxu0  ;;  %2687 = vmatprep.mubr.bf16.mxu1 %v1272_v20 }
 0x212   : > { %v1177_v47 = vadd.f32 %v2614_v24, %v3858_v31  ;;  %v1168_v28 = vpop.f32.mrb[63].mxu0  ;;  %2688 = vmatmul.mubr.bf16.gmra.mrb[52].mxu1 %v1273_v55  ;;  %v1242_v25 = vmax.f32 %v1174_v12, 0.0 }
 0x213   : > { %v1169_v36 = vadd.f32 %v3858_v31, %v1168_v28  ;;  %v1240_v45 = vmax.f32 %v1166_v46, 0.0 }
 0x214   : > { %v1243_v37 = vmax.f32 %v1177_v47, 0.0 }
 0x215   : > { %v1241_v26 = vmax.f32 %v1169_v36, 0.0 }
 0x216   : > { %v1275_v19 = vpack.c.bf16 %v1243_v37, %v1242_v25 }
 0x217   : > { %v1274_v18 = vpack.c.bf16 %v1241_v26, %v1240_v45 }
 0x219   : > { %2691 = vmatprep.mubr.bf16.mxu1 %v1274_v18 }
 0x21a   : > { %2692 = vmatmul.mubr.bf16.gmra.mrb[56].mxu1 %v1275_v19 }
 0x275   : > { %v2633_v17 = vpop.f32.mrb[64].mxu0 }
 0x276   : > { %v3930_v33 = vadd.f32 %v2633_v17, %v3927_v32  ;;  %v1381_v63 = vpop.f32.mrb[65].mxu0 }
 0x277   : > { %v2634_v48 = vpop.f32.mrb[66].mxu0  ;;  %v3937_v29 = vadd.f32 %v3927_v32, %v1381_v63 }
 0x278   : > { %v3933_v31 = vadd.f32 %v2634_v48, %v3927_v32  ;;  %1640 = vmax.xlane.f32.xlu0 %v3930_v33  ;;  %v1384_v52 = vpop.f32.mrb[67].mxu0 }
 0x279   : > { %v3941_v49 = vadd.f32 %v3927_v32, %v1384_v52 }
 0x27a   : > { %1642 = vmax.xlane.f32.xlu1 %v3933_v31 }
 0x27c   : > { %1636 = vmax.xlane.f32.xlu0 %v3937_v29 }
 0x27d   : > { %v2637_v53 = vpop.f32.mrb[0].mxu1 }
 0x27e   : > { %v3945_v57 = vadd.f32 %v2637_v53, %v3927_v32  ;;  %v1397_v16 = vpop.f32.mrb[1].mxu1  ;;  %1638 = vmax.xlane.f32.xlu1 %v3941_v49 }
 0x27f   : > { %v2638_v38 = vpop.f32.mrb[2].mxu1  ;;  %v3953_v62 = vadd.f32 %v3927_v32, %v1397_v16 }
 0x280   : > { %v3949_v42 = vadd.f32 %v2638_v38, %v3927_v32  ;;  %v1400_v56 = vpop.f32.mrb[3].mxu1  ;;  %1648 = vmax.xlane.f32.xlu0 %v3945_v57 }
 0x281   : > { %v3957_v4 = vadd.f32 %v3927_v32, %v1400_v56 }
 0x282   : > { %1650 = vmax.xlane.f32.xlu1 %v3949_v42 }
 0x284   : > { %1644 = vmax.xlane.f32.xlu0 %v3953_v62 }
 0x285   : > { %v2641_v43 = vpop.f32.mrb[4].mxu1 }
 0x286   : > { %v3961_v44 = vadd.f32 %v2641_v43, %v3927_v32  ;;  %v1413_v59 = vpop.f32.mrb[5].mxu1  ;;  %1646 = vmax.xlane.f32.xlu1 %v3957_v4 }
 0x287   : > { %v2642_v23 = vpop.f32.mrb[6].mxu1  ;;  %v3969_v39 = vadd.f32 %v3927_v32, %v1413_v59 }
 0x288   : > { %v3965_v60 = vadd.f32 %v2642_v23, %v3927_v32  ;;  %v1416_v50 = vpop.f32.mrb[7].mxu1  ;;  %1656 = vmax.xlane.f32.xlu0 %v3961_v44 }
 0x289   : > { %v3973_v51 = vadd.f32 %v3927_v32, %v1416_v50 }
 0x28a   : > { %1658 = vmax.xlane.f32.xlu1 %v3965_v60 }
 0x28c   : > { %1652 = vmax.xlane.f32.xlu0 %v3969_v39 }
 0x28d   : > { %v2645_v34 = vpop.f32.mrb[8].mxu1 }
 0x28e   : > { %v3977_v35 = vadd.f32 %v2645_v34, %v3927_v32  ;;  %v1429_v0 = vpop.f32.mrb[9].mxu1  ;;  %1654 = vmax.xlane.f32.xlu1 %v3973_v51 }
 0x28f   : > { %v2646_v2 = vpop.f32.mrb[10].mxu1  ;;  %v3985_v58 = vadd.f32 %v3927_v32, %v1429_v0 }
 0x290   : > { %v3981_v3 = vadd.f32 %v2646_v2, %v3927_v32  ;;  %v1432_v5 = vpop.f32.mrb[11].mxu1  ;;  %1664 = vmax.xlane.f32.xlu0 %v3977_v35 }
 0x291   : > { %v3989_v22 = vadd.f32 %v3927_v32, %v1432_v5 }
 0x292   : > { %1666 = vmax.xlane.f32.xlu1 %v3981_v3 }
 0x294   : > { %1660 = vmax.xlane.f32.xlu0 %v3985_v58 }
 0x295   : > { %v2649_v13 = vpop.f32.mrb[12].mxu1 }
 0x296   : > { %v3993_v61 = vadd.f32 %v2649_v13, %v3927_v32  ;;  %v1445_v7 = vpop.f32.mrb[13].mxu1  ;;  %1662 = vmax.xlane.f32.xlu1 %v3989_v22 }
 0x297   : > { %v2650_v1 = vpop.f32.mrb[14].mxu1  ;;  %v4001_v10 = vadd.f32 %v3927_v32, %v1445_v7 }
 0x298   : > { %v3997_v6 = vadd.f32 %v2650_v1, %v3927_v32  ;;  %v1448_v40 = vpop.f32.mrb[15].mxu1  ;;  %1672 = vmax.xlane.f32.xlu0 %v3993_v61 }
 0x299   : > { %v4005_v41 = vadd.f32 %v3927_v32, %v1448_v40 }
 0x29a   : > { %1674 = vmax.xlane.f32.xlu1 %v3997_v6 }
 0x29c   : > { %1668 = vmax.xlane.f32.xlu0 %v4001_v10 }
 0x29d   : > { %v2653_v11 = vpop.f32.mrb[16].mxu1 }
 0x29e   : > { %v4009_v14 = vadd.f32 %v2653_v11, %v3927_v32  ;;  %v1461_v27 = vpop.f32.mrb[17].mxu1  ;;  %1670 = vmax.xlane.f32.xlu1 %v4005_v41 }
 0x29f   : > { %v2654_v15 = vpop.f32.mrb[18].mxu1  ;;  %v4017_v30 = vadd.f32 %v3927_v32, %v1461_v27 }
 0x2a0   : > { %v4013_v54 = vadd.f32 %v2654_v15, %v3927_v32  ;;  %v1464_v8 = vpop.f32.mrb[19].mxu1  ;;  %1680 = vmax.xlane.f32.xlu0 %v4009_v14 }
 0x2a1   : > { %v4021_v55 = vadd.f32 %v3927_v32, %v1464_v8 }
 0x2a2   : > { %1682 = vmax.xlane.f32.xlu1 %v4013_v54 }
 0x2a4   : > { %1676 = vmax.xlane.f32.xlu0 %v4017_v30 }
 0x2a5   : > { %v2657_v20 = vpop.f32.mrb[20].mxu1 }
 0x2a6   : > { %v4025_v9 = vadd.f32 %v2657_v20, %v3927_v32  ;;  %v1477_v12 = vpop.f32.mrb[21].mxu1  ;;  %1678 = vmax.xlane.f32.xlu1 %v4021_v55 }
 0x2a7   : > { %v2658_v21 = vpop.f32.mrb[22].mxu1  ;;  %v4033_v47 = vadd.f32 %v3927_v32, %v1477_v12 }
 0x2a8   : > { %v4029_v46 = vadd.f32 %v2658_v21, %v3927_v32  ;;  %v1480_v24 = vpop.f32.mrb[23].mxu1  ;;  %1688 = vmax.xlane.f32.xlu0 %v4025_v9 }
 0x2a9   : > { %v4037_v28 = vadd.f32 %v3927_v32, %v1480_v24 }
 0x2aa   : > { %1690 = vmax.xlane.f32.xlu1 %v4029_v46 }
 0x2ac   : > { %1684 = vmax.xlane.f32.xlu0 %v4033_v47 }
 0x2ad   : > { %v2661_v36 = vpop.f32.mrb[24].mxu1 }
 0x2ae   : > { %v4041_v25 = vadd.f32 %v2661_v36, %v3927_v32  ;;  %v1493_v37 = vpop.f32.mrb[25].mxu1  ;;  %1686 = vmax.xlane.f32.xlu1 %v4037_v28 }
 0x2af   : > { %v2662_v45 = vpop.f32.mrb[26].mxu1  ;;  %v4049_v18 = vadd.f32 %v3927_v32, %v1493_v37 }
 0x2b0   : > { %v4045_v26 = vadd.f32 %v2662_v45, %v3927_v32  ;;  %v1496_v19 = vpop.f32.mrb[27].mxu1  ;;  %1696 = vmax.xlane.f32.xlu0 %v4041_v25 }
 0x2b1   : > { %v4053_v17 = vadd.f32 %v3927_v32, %v1496_v19 }
 0x2b2   : > { %1698 = vmax.xlane.f32.xlu1 %v4045_v26 }
 0x2b4   : > { %1692 = vmax.xlane.f32.xlu0 %v4049_v18 }
 0x2b5   : > { %v2665_v63 = vpop.f32.mrb[28].mxu1 }
 0x2b6   : > { %v4057_v48 = vadd.f32 %v2665_v63, %v3927_v32  ;;  %v1509_v52 = vpop.f32.mrb[29].mxu1  ;;  %1694 = vmax.xlane.f32.xlu1 %v4053_v17 }
 0x2b7   : > { %v2666_v53 = vpop.f32.mrb[30].mxu1  ;;  %v4065_v56 = vadd.f32 %v3927_v32, %v1509_v52 }
 0x2b8   : > { %v4061_v16 = vadd.f32 %v2666_v53, %v3927_v32  ;;  %v1512_v38 = vpop.f32.mrb[31].mxu1  ;;  %1704 = vmax.xlane.f32.xlu0 %v4057_v48 }
 0x2b9   : > { %v4069_v43 = vadd.f32 %v3927_v32, %v1512_v38 }
 0x2ba   : > { %1706 = vmax.xlane.f32.xlu1 %v4061_v16 }
 0x2bc   : > { %1700 = vmax.xlane.f32.xlu0 %v4065_v56 }
 0x2bd   : > { %v2669_v59 = vpop.f32.mrb[32].mxu1 }
 0x2be   : > { %v4073_v23 = vadd.f32 %v2669_v59, %v3927_v32  ;;  %v1525_v50 = vpop.f32.mrb[33].mxu1  ;;  %1702 = vmax.xlane.f32.xlu1 %v4069_v43 }
 0x2bf   : > { %v2670_v34 = vpop.f32.mrb[34].mxu1  ;;  %v4081_v5 = vadd.f32 %v3927_v32, %v1525_v50 }
 0x2c0   : > { %v4077_v0 = vadd.f32 %v2670_v34, %v3927_v32  ;;  %v1528_v2 = vpop.f32.mrb[35].mxu1  ;;  %1712 = vmax.xlane.f32.xlu0 %v4073_v23 }
 0x2c1   : > { %v4085_v13 = vadd.f32 %v3927_v32, %v1528_v2 }
 0x2c2   : > { %1714 = vmax.xlane.f32.xlu1 %v4077_v0 }
 0x2c4   : > { %1708 = vmax.xlane.f32.xlu0 %v4081_v5 }
 0x2c5   : > { %v2673_v7 = vpop.f32.mrb[36].mxu1 }
 0x2c6   : > { %v4089_v1 = vadd.f32 %v2673_v7, %v3927_v32  ;;  %v1541_v40 = vpop.f32.mrb[37].mxu1  ;;  %1710 = vmax.xlane.f32.xlu1 %v4085_v13 }
 0x2c7   : > { %v2674_v11 = vpop.f32.mrb[38].mxu1  ;;  %v4097_v8 = vadd.f32 %v3927_v32, %v1541_v40 }
 0x2c8   : > { %v4093_v27 = vadd.f32 %v2674_v11, %v3927_v32  ;;  %v1544_v15 = vpop.f32.mrb[39].mxu1  ;;  %1720 = vmax.xlane.f32.xlu0 %v4089_v1 }
 0x2c9   : > { %v4101_v20 = vadd.f32 %v3927_v32, %v1544_v15 }
 0x2ca   : > { %1722 = vmax.xlane.f32.xlu1 %v4093_v27 }
 0x2cc   : > { %1716 = vmax.xlane.f32.xlu0 %v4097_v8 }
 0x2cd   : > { %v2677_v12 = vpop.f32.mrb[40].mxu1 }
 0x2ce   : > { %v4105_v21 = vadd.f32 %v2677_v12, %v3927_v32  ;;  %v1557_v24 = vpop.f32.mrb[41].mxu1  ;;  %1718 = vmax.xlane.f32.xlu1 %v4101_v20 }
 0x2cf   : > { %v2678_v36 = vpop.f32.mrb[42].mxu1  ;;  %v4113_v19 = vadd.f32 %v3927_v32, %v1557_v24 }
 0x2d0   : > { %v4109_v37 = vadd.f32 %v2678_v36, %v3927_v32  ;;  %v1560_v45 = vpop.f32.mrb[43].mxu1  ;;  %1728 = vmax.xlane.f32.xlu0 %v4105_v21 }
 0x2d1   : > { %v4117_v63 = vadd.f32 %v3927_v32, %v1560_v45 }
 0x2d2   : > { %1730 = vmax.xlane.f32.xlu1 %v4109_v37 }
 0x2d4   : > { %1724 = vmax.xlane.f32.xlu0 %v4113_v19 }
 0x2d5   : > { %v2681_v52 = vpop.f32.mrb[44].mxu1 }
 0x2d6   : > { %v4121_v53 = vadd.f32 %v2681_v52, %v3927_v32  ;;  %v1573_v38 = vpop.f32.mrb[45].mxu1  ;;  %1726 = vmax.xlane.f32.xlu1 %v4117_v63 }
 0x2d7   : > { %v2682_v59 = vpop.f32.mrb[46].mxu1  ;;  %v4129_v2 = vadd.f32 %v3927_v32, %v1573_v38 }
 0x2d8   : > { %v4125_v50 = vadd.f32 %v2682_v59, %v3927_v32  ;;  %v1576_v34 = vpop.f32.mrb[47].mxu1  ;;  %1736 = vmax.xlane.f32.xlu0 %v4121_v53 }
 0x2d9   : > { %v4133_v7 = vadd.f32 %v3927_v32, %v1576_v34 }
 0x2da   : > { %1738 = vmax.xlane.f32.xlu1 %v4125_v50 }
 0x2dc   : > { %1732 = vmax.xlane.f32.xlu0 %v4129_v2 }
 0x2dd   : > { %v2685_v40 = vpop.f32.mrb[48].mxu1 }
 0x2de   : > { %v4137_v11 = vadd.f32 %v2685_v40, %v3927_v32  ;;  %v1589_v15 = vpop.f32.mrb[49].mxu1  ;;  %1734 = vmax.xlane.f32.xlu1 %v4133_v7 }
 0x2df   : > { %v2686_v12 = vpop.f32.mrb[50].mxu1  ;;  %v4145_v45 = vadd.f32 %v3927_v32, %v1589_v15 }
 0x2e0   : > { %v4141_v24 = vadd.f32 %v2686_v12, %v3927_v32  ;;  %v1592_v36 = vpop.f32.mrb[51].mxu1  ;;  %1744 = vmax.xlane.f32.xlu0 %v4137_v11 }
 0x2e1   : > { %4715 = vst [vmem:[#allocation6_spill] sm:$0xff] %v4145_v45  ;;  %v4149_v52 = vadd.f32 %v3927_v32, %v1592_v36 }
 0x2e2   : > { %4714 = vst [vmem:[#allocation5_spill] sm:$0xff] %v4141_v24  ;;  %1746 = vmax.xlane.f32.xlu1 %v4141_v24 }
 0x2e3   : > { %4716 = vst [vmem:[#allocation7_spill] sm:$0xff] %v4149_v52 }
 0x2e4   : > { %1740 = vmax.xlane.f32.xlu0 %v4145_v45 }
 0x2e5   : > { %v2689_v38 = vpop.f32.mrb[52].mxu1 }
 0x2e6   : > { %v4153_v59 = vadd.f32 %v2689_v38, %v3927_v32  ;;  %v1605_v34 = vpop.f32.mrb[53].mxu1  ;;  %1742 = vmax.xlane.f32.xlu1 %v4149_v52 }
 0x2e7   : > { %v2690_v40 = vpop.f32.mrb[54].mxu1  ;;  %v4161_v24 = vadd.f32 %v3927_v32, %v1605_v34 }
 0x2e8   : > { %4717 = vst [vmem:[#allocation8_spill] sm:$0xff] %v4153_v59  ;;  %v4157_v12 = vadd.f32 %v2690_v40, %v3927_v32  ;;  %v1608_v15 = vpop.f32.mrb[55].mxu1  ;;  %1752 = vmax.xlane.f32.xlu0 %v4153_v59 }
 0x2e9   : > { %4719 = vst [vmem:[#allocation10_spill] sm:$0xff] %v4161_v24  ;;  %v4165_v36 = vadd.f32 %v3927_v32, %v1608_v15 }
 0x2ea   : > { %4718 = vst [vmem:[#allocation9_spill] sm:$0xff] %v4157_v12  ;;  %1754 = vmax.xlane.f32.xlu1 %v4157_v12 }
 0x2eb   : > { %4720 = vst [vmem:[#allocation11_spill] sm:$0xff] %v4165_v36 }
 0x2ec   : > { %1748 = vmax.xlane.f32.xlu0 %v4161_v24 }
 0x2ed   : > { %v2693_v38 = vpop.f32.mrb[56].mxu1 }
 0x2ee   : > { %v4169_v52 = vadd.f32 %v2693_v38, %v3927_v32  ;;  %1750 = vmax.xlane.f32.xlu1 %v4165_v36  ;;  %v1621_v40 = vpop.f32.mrb[57].mxu1 }
 0x2ef   : > { %v2694_v45 = vpop.f32.mrb[58].mxu1  ;;  %v4177_v12 = vadd.f32 %v3927_v32, %v1621_v40 }
 0x2f0   : > { %4721 = vst [vmem:[#allocation12_spill] sm:$0xff] %v4169_v52  ;;  %v4173_v59 = vadd.f32 %v2694_v45, %v3927_v32  ;;  %1760 = vmax.xlane.f32.xlu0 %v4169_v52  ;;  %v1624_v34 = vpop.f32.mrb[59].mxu1 }
 0x2f1   : > { %v4181_v15 = vadd.f32 %v3927_v32, %v1624_v34 }
 0x2f2   : > { %4722 = vst [vmem:[#allocation13_spill] sm:$0xff] %v4173_v59  ;;  %1762 = vmax.xlane.f32.xlu1 %v4173_v59 }
 0x2f3   : > { %4723 = vst [vmem:[#allocation14_spill] sm:$0xff] %v4181_v15 }
 0x2f4   : > { %1756 = vmax.xlane.f32.xlu0 %v4177_v12 }
 0x2f6   : > { %1758 = vmax.xlane.f32.xlu1 %v4181_v15 }
 0x305   : > { %v1641_v38 = vpop.xlane.xlu0 %1640 }
 0x306   : > { %v4186_v36 = vsub.f32 %v3930_v33, %v1641_v38 }
 0x307   : > { %v1643_v45 = vpop.xlane.xlu1 %1642 }
 0x308   : > { %4724 = vst [vmem:[#allocation15_spill] sm:$0xff] %v4186_v36  ;;  %v1832_v52 = vmul.f32 1.442695, %v4186_v36  ;;  %v4190_v24 = vsub.f32 %v3933_v31, %v1643_v45 }
 0x309   : > { %v1637_v40 = vpop.xlane.xlu0 %1636 }
 0x30a   : > { %2890 = vpow2.f32 %v1832_v52  ;;  %v1834_v59 = vmul.f32 1.442695, %v4190_v24  ;;  %v4194_v32 = vsub.f32 %v3937_v29, %v1637_v40 }
 0x30b   : > { %v1639_v34 = vpop.xlane.xlu1 %1638 }
 0x30c   : > { %2892 = vpow2.f32 %v1834_v59  ;;  %v1828_v15 = vmul.f32 1.442695, %v4194_v32  ;;  %v4198_v33 = vsub.f32 %v3941_v49, %v1639_v34 }
 0x30d   : > { %v1649_v38 = vpop.xlane.xlu0 %1648 }
 0x30e   : > { %2894 = vpow2.f32 %v1828_v15  ;;  %v1830_v36 = vmul.f32 1.442695, %v4198_v33  ;;  %v4202_v31 = vsub.f32 %v3945_v57, %v1649_v38 }
 0x30f   : > { %v1651_v52 = vpop.xlane.xlu1 %1650 }
 0x310   : > { %4725 = vst [vmem:[#allocation16_spill] sm:$0xff] %v4202_v31  ;;  %2896 = vpow2.f32 %v1830_v36  ;;  %v1840_v45 = vmul.f32 1.442695, %v4202_v31  ;;  %v4206_v29 = vsub.f32 %v3949_v42, %v1651_v52 }
 0x311   : > { %v1645_v59 = vpop.xlane.xlu0 %1644 }
 0x312   : > { %2898 = vpow2.f32 %v1840_v45  ;;  %v1842_v40 = vmul.f32 1.442695, %v4206_v29  ;;  %v4210_v49 = vsub.f32 %v3953_v62, %v1645_v59 }
 0x313   : > { %v1647_v15 = vpop.xlane.xlu1 %1646 }
 0x314   : > { %v2891_v34 = vpop.eup %2890  ;;  %2900 = vpow2.f32 %v1842_v40  ;;  %v1836_v57 = vmul.f32 1.442695, %v4210_v49  ;;  %v4214_v38 = vsub.f32 %v3957_v4, %v1647_v15 }
 0x315   : > { %v1657_v36 = vpop.xlane.xlu0 %1656  ;;  %1960 = vadd.xlane.f32.xlu0 %v2891_v34 }
 0x316   : > { %v2893_v31 = vpop.eup %2892  ;;  %2902 = vpow2.f32 %v1836_v57  ;;  %v1838_v42 = vmul.f32 1.442695, %v4214_v38  ;;  %v4218_v52 = vsub.f32 %v3961_v44, %v1657_v36 }
 0x317   : > { %v1659_v45 = vpop.xlane.xlu1 %1658  ;;  %1962 = vadd.xlane.f32.xlu1 %v2893_v31 }
 0x318   : > { %v2895_v62 = vpop.eup %2894  ;;  %2904 = vpow2.f32 %v1838_v42  ;;  %v1848_v59 = vmul.f32 1.442695, %v4218_v52  ;;  %v4222_v40 = vsub.f32 %v3965_v60, %v1659_v45 }
 0x319   : > { %v1653_v4 = vpop.xlane.xlu0 %1652  ;;  %1956 = vadd.xlane.f32.xlu0 %v2895_v62 }
 0x31a   : > { %v2897_v15 = vpop.eup %2896  ;;  %2906 = vpow2.f32 %v1848_v59  ;;  %v1850_v34 = vmul.f32 1.442695, %v4222_v40  ;;  %v4226_v57 = vsub.f32 %v3969_v39, %v1653_v4 }
 0x31b   : > { %v1655_v44 = vpop.xlane.xlu1 %1654  ;;  %1958 = vadd.xlane.f32.xlu1 %v2897_v15 }
 0x31c   : > { %v2899_v36 = vpop.eup %2898  ;;  %2908 = vpow2.f32 %v1850_v34  ;;  %v1844_v31 = vmul.f32 1.442695, %v4226_v57  ;;  %v4230_v42 = vsub.f32 %v3973_v51, %v1655_v44 }
 0x31d   : > { %v1665_v60 = vpop.xlane.xlu0 %1664  ;;  %1968 = vadd.xlane.f32.xlu0 %v2899_v36 }
 0x31e   : > { %v2901_v45 = vpop.eup %2900  ;;  %2910 = vpow2.f32 %v1844_v31  ;;  %v1846_v62 = vmul.f32 1.442695, %v4230_v42  ;;  %v4234_v59 = vsub.f32 %v3977_v35, %v1665_v60 }
 0x31f   : > { %v1667_v39 = vpop.xlane.xlu1 %1666  ;;  %1970 = vadd.xlane.f32.xlu1 %v2901_v45 }
 0x320   : > { %v2903_v4 = vpop.eup %2902  ;;  %2912 = vpow2.f32 %v1846_v62  ;;  %v1856_v15 = vmul.f32 1.442695, %v4234_v59  ;;  %v4238_v34 = vsub.f32 %v3981_v3, %v1667_v39 }
 0x321   : > { %v1661_v51 = vpop.xlane.xlu0 %1660  ;;  %1964 = vadd.xlane.f32.xlu0 %v2903_v4 }
 0x322   : > { %v2905_v44 = vpop.eup %2904  ;;  %2914 = vpow2.f32 %v1856_v15  ;;  %v1858_v36 = vmul.f32 1.442695, %v4238_v34  ;;  %v4242_v31 = vsub.f32 %v3985_v58, %v1661_v51 }
 0x323   : > { %v1663_v35 = vpop.xlane.xlu1 %1662  ;;  %1966 = vadd.xlane.f32.xlu1 %v2905_v44 }
 0x324   : > { %v2907_v60 = vpop.eup %2906  ;;  %2916 = vpow2.f32 %v1858_v36  ;;  %v1852_v45 = vmul.f32 1.442695, %v4242_v31  ;;  %v4246_v62 = vsub.f32 %v3989_v22, %v1663_v35 }
 0x325   : > { %v1673_v3 = vpop.xlane.xlu0 %1672  ;;  %1976 = vadd.xlane.f32.xlu0 %v2907_v60 }
 0x326   : > { %v2909_v39 = vpop.eup %2908  ;;  %2918 = vpow2.f32 %v1852_v45  ;;  %v1854_v4 = vmul.f32 1.442695, %v4246_v62  ;;  %v4250_v15 = vsub.f32 %v3993_v61, %v1673_v3 }
 0x327   : > { %v1675_v58 = vpop.xlane.xlu1 %1674  ;;  %1978 = vadd.xlane.f32.xlu1 %v2909_v39 }
 0x328   : > { %v2911_v51 = vpop.eup %2910  ;;  %2920 = vpow2.f32 %v1854_v4  ;;  %v1864_v44 = vmul.f32 1.442695, %v4250_v15  ;;  %v4254_v36 = vsub.f32 %v3997_v6, %v1675_v58 }
 0x329   : > { %v1669_v22 = vpop.xlane.xlu0 %1668  ;;  %1972 = vadd.xlane.f32.xlu0 %v2911_v51 }
 0x32a   : > { %v2913_v35 = vpop.eup %2912  ;;  %2922 = vpow2.f32 %v1864_v44  ;;  %v1866_v60 = vmul.f32 1.442695, %v4254_v36  ;;  %v4258_v45 = vsub.f32 %v4001_v10, %v1669_v22 }
 0x32b   : > { %v1671_v61 = vpop.xlane.xlu1 %1670  ;;  %1974 = vadd.xlane.f32.xlu1 %v2913_v35 }
 0x32c   : > { %v2915_v3 = vpop.eup %2914  ;;  %2924 = vpow2.f32 %v1866_v60  ;;  %v1860_v39 = vmul.f32 1.442695, %v4258_v45  ;;  %v4262_v4 = vsub.f32 %v4005_v41, %v1671_v61 }
 0x32d   : > { %v1681_v6 = vpop.xlane.xlu0 %1680  ;;  %1984 = vadd.xlane.f32.xlu0 %v2915_v3 }
 0x32e   : > { %v2917_v58 = vpop.eup %2916  ;;  %2926 = vpow2.f32 %v1860_v39  ;;  %v1862_v51 = vmul.f32 1.442695, %v4262_v4  ;;  %v4266_v44 = vsub.f32 %v4009_v14, %v1681_v6 }
 0x32f   : > { %v1683_v10 = vpop.xlane.xlu1 %1682  ;;  %1986 = vadd.xlane.f32.xlu1 %v2917_v58 }
 0x330   : > { %v2919_v22 = vpop.eup %2918  ;;  %2928 = vpow2.f32 %v1862_v51  ;;  %v1872_v35 = vmul.f32 1.442695, %v4266_v44  ;;  %v4270_v60 = vsub.f32 %v4013_v54, %v1683_v10 }
 0x331   : > { %v1677_v41 = vpop.xlane.xlu0 %1676  ;;  %1980 = vadd.xlane.f32.xlu0 %v2919_v22 }
 0x332   : > { %v2921_v61 = vpop.eup %2920  ;;  %2930 = vpow2.f32 %v1872_v35  ;;  %v1874_v3 = vmul.f32 1.442695, %v4270_v60  ;;  %v4274_v39 = vsub.f32 %v4017_v30, %v1677_v41 }
 0x333   : > { %v1679_v14 = vpop.xlane.xlu1 %1678  ;;  %1982 = vadd.xlane.f32.xlu1 %v2921_v61 }
 0x334   : > { %v2923_v6 = vpop.eup %2922  ;;  %2932 = vpow2.f32 %v1874_v3  ;;  %v1868_v58 = vmul.f32 1.442695, %v4274_v39  ;;  %v4278_v51 = vsub.f32 %v4021_v55, %v1679_v14 }
 0x335   : > { %v1689_v54 = vpop.xlane.xlu0 %1688  ;;  %1992 = vadd.xlane.f32.xlu0 %v2923_v6 }
 0x336   : > { %v2925_v10 = vpop.eup %2924  ;;  %2934 = vpow2.f32 %v1868_v58  ;;  %v1870_v22 = vmul.f32 1.442695, %v4278_v51  ;;  %v4282_v35 = vsub.f32 %v4025_v9, %v1689_v54 }
 0x337   : > { %v1691_v30 = vpop.xlane.xlu1 %1690  ;;  %1994 = vadd.xlane.f32.xlu1 %v2925_v10 }
 0x338   : > { %v2927_v41 = vpop.eup %2926  ;;  %2936 = vpow2.f32 %v1870_v22  ;;  %v1880_v61 = vmul.f32 1.442695, %v4282_v35  ;;  %v4286_v3 = vsub.f32 %v4029_v46, %v1691_v30 }
 0x339   : > { %v1685_v55 = vpop.xlane.xlu0 %1684  ;;  %1988 = vadd.xlane.f32.xlu0 %v2927_v41 }
 0x33a   : > { %v2929_v14 = vpop.eup %2928  ;;  %2938 = vpow2.f32 %v1880_v61  ;;  %v1882_v6 = vmul.f32 1.442695, %v4286_v3  ;;  %v4290_v58 = vsub.f32 %v4033_v47, %v1685_v55 }
 0x33b   : > { %v1687_v9 = vpop.xlane.xlu1 %1686  ;;  %1990 = vadd.xlane.f32.xlu1 %v2929_v14 }
 0x33c   : > { %v2931_v54 = vpop.eup %2930  ;;  %2940 = vpow2.f32 %v1882_v6  ;;  %v1876_v10 = vmul.f32 1.442695, %v4290_v58  ;;  %v4294_v22 = vsub.f32 %v4037_v28, %v1687_v9 }
 0x33d   : > { %v1697_v46 = vpop.xlane.xlu0 %1696  ;;  %2000 = vadd.xlane.f32.xlu0 %v2931_v54 }
 0x33e   : > { %v2933_v30 = vpop.eup %2932  ;;  %2942 = vpow2.f32 %v1876_v10  ;;  %v1878_v41 = vmul.f32 1.442695, %v4294_v22  ;;  %v4298_v61 = vsub.f32 %v4041_v25, %v1697_v46 }
 0x33f   : > { %v1699_v47 = vpop.xlane.xlu1 %1698  ;;  %2002 = vadd.xlane.f32.xlu1 %v2933_v30 }
 0x340   : > { %v2935_v55 = vpop.eup %2934  ;;  %2944 = vpow2.f32 %v1878_v41  ;;  %v1888_v14 = vmul.f32 1.442695, %v4298_v61  ;;  %v4302_v6 = vsub.f32 %v4045_v26, %v1699_v47 }
 0x341   : > { %v1693_v28 = vpop.xlane.xlu0 %1692  ;;  %1996 = vadd.xlane.f32.xlu0 %v2935_v55 }
 0x342   : > { %v2937_v9 = vpop.eup %2936  ;;  %2946 = vpow2.f32 %v1888_v14  ;;  %v1890_v54 = vmul.f32 1.442695, %v4302_v6  ;;  %v4306_v10 = vsub.f32 %v4049_v18, %v1693_v28 }
 0x343   : > { %v1695_v25 = vpop.xlane.xlu1 %1694  ;;  %1998 = vadd.xlane.f32.xlu1 %v2937_v9 }
 0x344   : > { %v2939_v46 = vpop.eup %2938  ;;  %2948 = vpow2.f32 %v1890_v54  ;;  %v1884_v30 = vmul.f32 1.442695, %v4306_v10  ;;  %v4310_v41 = vsub.f32 %v4053_v17, %v1695_v25 }
 0x345   : > { %v1705_v26 = vpop.xlane.xlu0 %1704  ;;  %2008 = vadd.xlane.f32.xlu0 %v2939_v46 }
 0x346   : > { %v2941_v47 = vpop.eup %2940  ;;  %2950 = vpow2.f32 %v1884_v30  ;;  %v1886_v55 = vmul.f32 1.442695, %v4310_v41  ;;  %v4314_v14 = vsub.f32 %v4057_v48, %v1705_v26 }
 0x347   : > { %v1707_v18 = vpop.xlane.xlu1 %1706  ;;  %2010 = vadd.xlane.f32.xlu1 %v2941_v47 }
 0x348   : > { %v2943_v28 = vpop.eup %2942  ;;  %2952 = vpow2.f32 %v1886_v55  ;;  %v1896_v9 = vmul.f32 1.442695, %v4314_v14  ;;  %v4318_v54 = vsub.f32 %v4061_v16, %v1707_v18 }
 0x349   : > { %v1701_v17 = vpop.xlane.xlu0 %1700  ;;  %2004 = vadd.xlane.f32.xlu0 %v2943_v28 }
 0x34a   : > { %v2945_v25 = vpop.eup %2944  ;;  %2954 = vpow2.f32 %v1896_v9  ;;  %v1898_v46 = vmul.f32 1.442695, %v4318_v54  ;;  %v4322_v30 = vsub.f32 %v4065_v56, %v1701_v17 }
 0x34b   : > { %v1703_v48 = vpop.xlane.xlu1 %1702  ;;  %2006 = vadd.xlane.f32.xlu1 %v2945_v25 }
 0x34c   : > { %v2947_v26 = vpop.eup %2946  ;;  %2956 = vpow2.f32 %v1898_v46  ;;  %v1892_v47 = vmul.f32 1.442695, %v4322_v30  ;;  %v4326_v55 = vsub.f32 %v4069_v43, %v1703_v48 }
 0x34d   : > { %v1713_v16 = vpop.xlane.xlu0 %1712  ;;  %2016 = vadd.xlane.f32.xlu0 %v2947_v26 }
 0x34e   : > { %v2949_v18 = vpop.eup %2948  ;;  %2958 = vpow2.f32 %v1892_v47  ;;  %v1894_v28 = vmul.f32 1.442695, %v4326_v55  ;;  %v4330_v9 = vsub.f32 %v4073_v23, %v1713_v16 }
 0x34f   : > { %v1715_v56 = vpop.xlane.xlu1 %1714  ;;  %2018 = vadd.xlane.f32.xlu1 %v2949_v18 }
 0x350   : > { %v2951_v17 = vpop.eup %2950  ;;  %2960 = vpow2.f32 %v1894_v28  ;;  %v1904_v25 = vmul.f32 1.442695, %v4330_v9  ;;  %v4334_v46 = vsub.f32 %v4077_v0, %v1715_v56 }
 0x351   : > { %v1709_v43 = vpop.xlane.xlu0 %1708  ;;  %2012 = vadd.xlane.f32.xlu0 %v2951_v17 }
 0x352   : > { %v2953_v48 = vpop.eup %2952  ;;  %2962 = vpow2.f32 %v1904_v25  ;;  %v1906_v26 = vmul.f32 1.442695, %v4334_v46  ;;  %v4338_v47 = vsub.f32 %v4081_v5, %v1709_v43 }
 0x353   : > { %v1711_v23 = vpop.xlane.xlu1 %1710  ;;  %2014 = vadd.xlane.f32.xlu1 %v2953_v48 }
 0x354   : > { %v2955_v16 = vpop.eup %2954  ;;  %2964 = vpow2.f32 %v1906_v26  ;;  %v1900_v18 = vmul.f32 1.442695, %v4338_v47  ;;  %v4342_v28 = vsub.f32 %v4085_v13, %v1711_v23 }
 0x355   : > { %v1721_v0 = vpop.xlane.xlu0 %1720  ;;  %2024 = vadd.xlane.f32.xlu0 %v2955_v16 }
 0x356   : > { %v2957_v56 = vpop.eup %2956  ;;  %2966 = vpow2.f32 %v1900_v18  ;;  %v1902_v17 = vmul.f32 1.442695, %v4342_v28  ;;  %v4346_v25 = vsub.f32 %v4089_v1, %v1721_v0 }
 0x357   : > { %v1723_v5 = vpop.xlane.xlu1 %1722  ;;  %2026 = vadd.xlane.f32.xlu1 %v2957_v56 }
 0x358   : > { %v2959_v43 = vpop.eup %2958  ;;  %2968 = vpow2.f32 %v1902_v17  ;;  %v1912_v48 = vmul.f32 1.442695, %v4346_v25  ;;  %v4350_v26 = vsub.f32 %v4093_v27, %v1723_v5 }
 0x359   : > { %v1717_v13 = vpop.xlane.xlu0 %1716  ;;  %2020 = vadd.xlane.f32.xlu0 %v2959_v43 }
 0x35a   : > { %v2961_v23 = vpop.eup %2960  ;;  %2970 = vpow2.f32 %v1912_v48  ;;  %v1914_v16 = vmul.f32 1.442695, %v4350_v26  ;;  %v4354_v18 = vsub.f32 %v4097_v8, %v1717_v13 }
 0x35b   : > { %v1719_v1 = vpop.xlane.xlu1 %1718  ;;  %2022 = vadd.xlane.f32.xlu1 %v2961_v23 }
 0x35c   : > { %v2963_v0 = vpop.eup %2962  ;;  %2972 = vpow2.f32 %v1914_v16  ;;  %v1908_v56 = vmul.f32 1.442695, %v4354_v18  ;;  %v4358_v17 = vsub.f32 %v4101_v20, %v1719_v1 }
 0x35d   : > { %v1729_v27 = vpop.xlane.xlu0 %1728  ;;  %2032 = vadd.xlane.f32.xlu0 %v2963_v0 }
 0x35e   : > { %v2965_v5 = vpop.eup %2964  ;;  %2974 = vpow2.f32 %v1908_v56  ;;  %v1910_v43 = vmul.f32 1.442695, %v4358_v17  ;;  %v4362_v48 = vsub.f32 %v4105_v21, %v1729_v27 }
 0x35f   : > { %v1731_v8 = vpop.xlane.xlu1 %1730  ;;  %2034 = vadd.xlane.f32.xlu1 %v2965_v5 }
 0x360   : > { %v2967_v13 = vpop.eup %2966  ;;  %2976 = vpow2.f32 %v1910_v43  ;;  %v1920_v23 = vmul.f32 1.442695, %v4362_v48  ;;  %v4366_v16 = vsub.f32 %v4109_v37, %v1731_v8 }
 0x361   : > { %v1725_v20 = vpop.xlane.xlu0 %1724  ;;  %2028 = vadd.xlane.f32.xlu0 %v2967_v13 }
 0x362   : > { %v2969_v1 = vpop.eup %2968  ;;  %2978 = vpow2.f32 %v1920_v23  ;;  %v1922_v0 = vmul.f32 1.442695, %v4366_v16  ;;  %v4370_v56 = vsub.f32 %v4113_v19, %v1725_v20 }
 0x363   : > { %v1727_v21 = vpop.xlane.xlu1 %1726  ;;  %2030 = vadd.xlane.f32.xlu1 %v2969_v1 }
 0x364   : > { %v2971_v27 = vpop.eup %2970  ;;  %2980 = vpow2.f32 %v1922_v0  ;;  %v1916_v5 = vmul.f32 1.442695, %v4370_v56  ;;  %v4374_v43 = vsub.f32 %v4117_v63, %v1727_v21 }
 0x365   : > { %v1737_v37 = vpop.xlane.xlu0 %1736  ;;  %2040 = vadd.xlane.f32.xlu0 %v2971_v27 }
 0x366   : > { %v2973_v8 = vpop.eup %2972  ;;  %2982 = vpow2.f32 %v1916_v5  ;;  %v1918_v13 = vmul.f32 1.442695, %v4374_v43  ;;  %v4378_v23 = vsub.f32 %v4121_v53, %v1737_v37 }
 0x367   : > { %v1739_v19 = vpop.xlane.xlu1 %1738  ;;  %2042 = vadd.xlane.f32.xlu1 %v2973_v8 }
 0x368   : > { %v2975_v20 = vpop.eup %2974  ;;  %2984 = vpow2.f32 %v1918_v13  ;;  %v1928_v1 = vmul.f32 1.442695, %v4378_v23  ;;  %v4382_v0 = vsub.f32 %v4125_v50, %v1739_v19 }
 0x369   : > { %v1733_v63 = vpop.xlane.xlu0 %1732  ;;  %2036 = vadd.xlane.f32.xlu0 %v2975_v20 }
 0x36a   : > { %4726 = vst [vmem:[#allocation17_spill] sm:$0xff] %v4382_v0  ;;  %v2977_v21 = vpop.eup %2976  ;;  %2986 = vpow2.f32 %v1928_v1  ;;  %v1930_v27 = vmul.f32 1.442695, %v4382_v0  ;;  %v4386_v5 = vsub.f32 %v4129_v2, %v1733_v63 }
 0x36b   : > { %v1735_v53 = vpop.xlane.xlu1 %1734  ;;  %2038 = vadd.xlane.f32.xlu1 %v2977_v21 }
 0x36c   : > { %4727 = vst [vmem:[#allocation18_spill] sm:$0xff] %v4386_v5  ;;  %v2979_v37 = vpop.eup %2978  ;;  %2988 = vpow2.f32 %v1930_v27  ;;  %v1924_v8 = vmul.f32 1.442695, %v4386_v5  ;;  %v4390_v13 = vsub.f32 %v4133_v7, %v1735_v53  ;;  %v4730_v27 = vld [vmem:[#allocation5_spill] sm:$0xff] }
 0x36d   : > { %v1745_v50 = vpop.xlane.xlu0 %1744  ;;  %2048 = vadd.xlane.f32.xlu0 %v2979_v37 }
 0x36e   : > { %4728 = vst [vmem:[#allocation19_spill] sm:$0xff] %v4390_v13  ;;  %v2981_v19 = vpop.eup %2980  ;;  %2990 = vpow2.f32 %v1924_v8  ;;  %v1926_v20 = vmul.f32 1.442695, %v4390_v13  ;;  %v4394_v1 = vsub.f32 %v4137_v11, %v1745_v50  ;;  %v4732_v8 = vld [vmem:[#allocation6_spill] sm:$0xff] }
 0x36f   : > { %v1747_v2 = vpop.xlane.xlu1 %1746  ;;  %2050 = vadd.xlane.f32.xlu1 %v2981_v19 }
 0x370   : > { %4729 = vst [vmem:[#allocation20_spill] sm:$0xff] %v4394_v1  ;;  %v2983_v63 = vpop.eup %2982  ;;  %2992 = vpow2.f32 %v1926_v20  ;;  %v1936_v21 = vmul.f32 1.442695, %v4394_v1  ;;  %v4398_v5 = vsub.f32 %v4730_v27, %v1747_v2  ;;  %v4734_v20 = vld [vmem:[#allocation7_spill] sm:$0xff] }
 0x371   : > { %v1741_v7 = vpop.xlane.xlu0 %1740  ;;  %2044 = vadd.xlane.f32.xlu0 %v2983_v63 }
 0x372   : > { %4731 = vst [vmem:[#allocation21_spill] sm:$0xff] %v4398_v5  ;;  %v2985_v53 = vpop.eup %2984  ;;  %2994 = vpow2.f32 %v1936_v21  ;;  %v1938_v37 = vmul.f32 1.442695, %v4398_v5  ;;  %v4402_v13 = vsub.f32 %v4732_v8, %v1741_v7  ;;  %v4736_v21 = vld [vmem:[#allocation8_spill] sm:$0xff] }
 0x373   : > { %v1743_v11 = vpop.xlane.xlu1 %1742  ;;  %2046 = vadd.xlane.f32.xlu1 %v2985_v53 }
 0x374   : > { %4733 = vst [vmem:[#allocation22_spill] sm:$0xff] %v4402_v13  ;;  %v2987_v50 = vpop.eup %2986  ;;  %2996 = vpow2.f32 %v1938_v37  ;;  %v1932_v19 = vmul.f32 1.442695, %v4402_v13  ;;  %v4406_v1 = vsub.f32 %v4734_v20, %v1743_v11  ;;  %v4738_v37 = vld [vmem:[#allocation9_spill] sm:$0xff] }
 0x375   : > { %v1753_v2 = vpop.xlane.xlu0 %1752  ;;  %2056 = vadd.xlane.f32.xlu0 %v2987_v50 }
 0x376   : > { %4735 = vst [vmem:[#allocation23_spill] sm:$0xff] %v4406_v1  ;;  %v2989_v27 = vpop.eup %2988  ;;  %2998 = vpow2.f32 %v1932_v19  ;;  %v1934_v63 = vmul.f32 1.442695, %v4406_v1  ;;  %v4410_v5 = vsub.f32 %v4736_v21, %v1753_v2  ;;  %v4740_v19 = vld [vmem:[#allocation10_spill] sm:$0xff] }
 0x377   : > { %v1755_v7 = vpop.xlane.xlu1 %1754  ;;  %2058 = vadd.xlane.f32.xlu1 %v2989_v27 }
 0x378   : > { %4737 = vst [vmem:[#allocation5_spill] sm:$0xff] %v4410_v5  ;;  %v2991_v8 = vpop.eup %2990  ;;  %3000 = vpow2.f32 %v1934_v63  ;;  %v1944_v53 = vmul.f32 1.442695, %v4410_v5  ;;  %v4414_v13 = vsub.f32 %v4738_v37, %v1755_v7  ;;  %v4742_v63 = vld [vmem:[#allocation11_spill] sm:$0xff] }
 0x379   : > { %v1749_v11 = vpop.xlane.xlu0 %1748  ;;  %2052 = vadd.xlane.f32.xlu0 %v2991_v8 }
 0x37a   : > { %4739 = vst [vmem:[#allocation6_spill] sm:$0xff] %v4414_v13  ;;  %v2993_v20 = vpop.eup %2992  ;;  %3002 = vpow2.f32 %v1944_v53  ;;  %v1946_v50 = vmul.f32 1.442695, %v4414_v13  ;;  %v4418_v1 = vsub.f32 %v4740_v19, %v1749_v11  ;;  %v4744_v19 = vld [vmem:[#allocation12_spill] sm:$0xff] }
 0x37b   : > { %v1751_v2 = vpop.xlane.xlu1 %1750  ;;  %2054 = vadd.xlane.f32.xlu1 %v2993_v20 }
 0x37c   : > { %4741 = vst [vmem:[#allocation7_spill] sm:$0xff] %v4418_v1  ;;  %v2995_v21 = vpop.eup %2994  ;;  %3004 = vpow2.f32 %v1946_v50  ;;  %v1940_v27 = vmul.f32 1.442695, %v4418_v1  ;;  %v4422_v5 = vsub.f32 %v4742_v63, %v1751_v2  ;;  %v4745_v63 = vld [vmem:[#allocation13_spill] sm:$0xff] }
 0x37d   : > { %v1761_v7 = vpop.xlane.xlu0 %1760  ;;  %2064 = vadd.xlane.f32.xlu0 %v2995_v21 }
 0x37e   : > { %4743 = vst [vmem:[#allocation8_spill] sm:$0xff] %v4422_v5  ;;  %v2997_v37 = vpop.eup %2996  ;;  %3006 = vpow2.f32 %v1940_v27  ;;  %v1942_v8 = vmul.f32 1.442695, %v4422_v5  ;;  %v4426_v50 = vsub.f32 %v4744_v19, %v1761_v7 }
 0x37f   : > { %v1763_v53 = vpop.xlane.xlu1 %1762  ;;  %2066 = vadd.xlane.f32.xlu1 %v2997_v37  ;;  %v4746_v37 = vld [vmem:[#allocation14_spill] sm:$0xff] }
 0x380   : > { %v2999_v13 = vpop.eup %2998  ;;  %3008 = vpow2.f32 %v1942_v8  ;;  %v4432_v27 = vsub.f32 %v4745_v63, %v1763_v53  ;;  %v1952_v8 = vmul.f32 1.442695, %v4426_v50 }
 0x381   : > { %2060 = vadd.xlane.f32.xlu0 %v2999_v13  ;;  %v1757_v11 = vpop.xlane.xlu0 %1756 }
 0x382   : > { %v3001_v20 = vpop.eup %3000  ;;  %v4429_v1 = vsub.f32 %v4177_v12, %v1757_v11  ;;  %v1954_v11 = vmul.f32 1.442695, %v4432_v27 }
 0x383   : > { %2062 = vadd.xlane.f32.xlu1 %v3001_v20  ;;  %v1759_v2 = vpop.xlane.xlu1 %1758 }
 0x384   : > { %v3003_v21 = vpop.eup %3002  ;;  %v1948_v5 = vmul.f32 1.442695, %v4429_v1  ;;  %v4436_v0 = vsub.f32 %v4746_v37, %v1759_v2 }
 0x385   : > { %2072 = vadd.xlane.f32.xlu0 %v3003_v21 }
 0x386   : > { %v3005_v13 = vpop.eup %3004  ;;  %3010 = vpow2.f32 %v1948_v5  ;;  %v1950_v7 = vmul.f32 1.442695, %v4436_v0 }
 0x387   : > { %2074 = vadd.xlane.f32.xlu1 %v3005_v13 }
 0x388   : > { %v3007_v12 = vpop.eup %3006  ;;  %3012 = vpow2.f32 %v1950_v7 }
 0x389   : > { %2068 = vadd.xlane.f32.xlu0 %v3007_v12  ;;  %3014 = vpow2.f32 %v1952_v8 }
 0x38a   : > { %v3009_v53 = vpop.eup %3008  ;;  %3016 = vpow2.f32 %v1954_v11 }
 0x38b   : > { %2070 = vadd.xlane.f32.xlu1 %v3009_v53 }
 0x390   : > { %v3011_v20 = vpop.eup %3010 }
 0x391   : > { %2076 = vadd.xlane.f32.xlu0 %v3011_v20 }
 0x392   : > { %v3013_v19 = vpop.eup %3012 }
 0x393   : > { %2078 = vadd.xlane.f32.xlu1 %v3013_v19  ;;  %v3015_v2 = vpop.eup %3014  ;;  %v4747_v19 = vld [vmem:[#allocation15_spill] sm:$0xff] }
 0x394   : > { %v3017_v5 = vpop.eup %3016 }
 0x395   : > { %2080 = vadd.xlane.f32.xlu0 %v3015_v2 }
 0x397   : > { %2082 = vadd.xlane.f32.xlu1 %v3017_v5 }
 0x3a2   : > { %v1961_v21 = vpop.xlane.xlu0 %1960 }
 0x3a3   : > { %3018 = vlog2.f32 %v1961_v21 }
 0x3a4   : > { %v1963_v63 = vpop.xlane.xlu1 %1962 }
 0x3a5   : > { %3020 = vlog2.f32 %v1963_v63 }
 0x3a6   : > { %v1957_v37 = vpop.xlane.xlu0 %1956 }
 0x3a7   : > { %3022 = vlog2.f32 %v1957_v37 }
 0x3a8   : > { %v1959_v13 = vpop.xlane.xlu1 %1958 }
 0x3a9   : > { %3024 = vlog2.f32 %v1959_v13 }
 0x3aa   : > { %v1969_v8 = vpop.xlane.xlu0 %1968 }
 0x3ab   : > { %3026 = vlog2.f32 %v1969_v8 }
 0x3ac   : > { %v1971_v7 = vpop.xlane.xlu1 %1970 }
 0x3ad   : > { %v3019_v12 = vpop.eup %3018  ;;  %3028 = vlog2.f32 %v1971_v7 }
 0x3ae   : > { %v2089_v11 = vmul.f32 0.6931472, %v3019_v12  ;;  %v1965_v53 = vpop.xlane.xlu0 %1964 }
 0x3af   : > { %v3021_v20 = vpop.eup %3020  ;;  %3030 = vlog2.f32 %v1965_v53 }
 0x3b0   : > { %v2214_v2 = vsub.f32 %v4747_v19, %v2089_v11  ;;  %v2091_v5 = vmul.f32 0.6931472, %v3021_v20  ;;  %v1967_v21 = vpop.xlane.xlu1 %1966 }
 0x3b1   : > { %v3023_v63 = vpop.eup %3022  ;;  %3032 = vlog2.f32 %v1967_v21 }
 0x3b2   : > { %2278 = vst [vmem:[%s4445_s26 + $0x10] sm:$0xff] %v2214_v2  ;;  %v2215_v37 = vsub.f32 %v4190_v24, %v2091_v5  ;;  %v2085_v13 = vmul.f32 0.6931472, %v3023_v63  ;;  %v1977_v8 = vpop.xlane.xlu0 %1976  ;;  %v4748_v5 = vld [vmem:[#allocation16_spill] sm:$0xff] }
 0x3b3   : > { %v3025_v7 = vpop.eup %3024  ;;  %3034 = vlog2.f32 %v1977_v8 }
 0x3b4   : > { %2279 = vst [vmem:[%s4445_s26 + $0x18] sm:$0xff] %v2215_v37  ;;  %v2212_v12 = vsub.f32 %v4194_v32, %v2085_v13  ;;  %v2087_v11 = vmul.f32 0.6931472, %v3025_v7  ;;  %v1979_v53 = vpop.xlane.xlu1 %1978 }
 0x3b5   : > { %v3027_v20 = vpop.eup %3026  ;;  %3036 = vlog2.f32 %v1979_v53 }
 0x3b6   : > { %2276 = vst [vmem:[%s4445_s26] sm:$0xff] %v2212_v12  ;;  %v2213_v19 = vsub.f32 %v4198_v33, %v2087_v11  ;;  %v2097_v21 = vmul.f32 0.6931472, %v3027_v20  ;;  %v1973_v2 = vpop.xlane.xlu0 %1972 }
 0x3b7   : > { %v3029_v24 = vpop.eup %3028  ;;  %3038 = vlog2.f32 %v1973_v2 }
 0x3b8   : > { %2277 = vst [vmem:[%s4445_s26 + $0x8] sm:$0xff] %v2213_v19  ;;  %v2218_v63 = vsub.f32 %v4748_v5, %v2097_v21  ;;  %v2099_v8 = vmul.f32 0.6931472, %v3029_v24  ;;  %v1975_v37 = vpop.xlane.xlu1 %1974 }
 0x3b9   : > { %v3031_v32 = vpop.eup %3030  ;;  %3040 = vlog2.f32 %v1975_v37 }
 0x3ba   : > { %2282 = vst [vmem:[%s4445_s26 + $0x30] sm:$0xff] %v2218_v63  ;;  %v2219_v13 = vsub.f32 %v4206_v29, %v2099_v8  ;;  %v2093_v7 = vmul.f32 0.6931472, %v3031_v32  ;;  %v1985_v12 = vpop.xlane.xlu0 %1984 }
 0x3bb   : > { %v3033_v33 = vpop.eup %3032  ;;  %3042 = vlog2.f32 %v1985_v12 }
 0x3bc   : > { %2283 = vst [vmem:[%s4445_s26 + $0x38] sm:$0xff] %v2219_v13  ;;  %v2216_v11 = vsub.f32 %v4210_v49, %v2093_v7  ;;  %v2095_v53 = vmul.f32 0.6931472, %v3033_v33  ;;  %v1987_v20 = vpop.xlane.xlu1 %1986 }
 0x3bd   : > { %v3035_v19 = vpop.eup %3034  ;;  %3044 = vlog2.f32 %v1987_v20 }
 0x3be   : > { %2280 = vst [vmem:[%s4445_s26 + $0x20] sm:$0xff] %v2216_v11  ;;  %v2217_v21 = vsub.f32 %v4214_v38, %v2095_v53  ;;  %v2105_v2 = vmul.f32 0.6931472, %v3035_v19  ;;  %v1981_v24 = vpop.xlane.xlu0 %1980 }
 0x3bf   : > { %v3037_v29 = vpop.eup %3036  ;;  %3046 = vlog2.f32 %v1981_v24 }
 0x3c0   : > { %2281 = vst [vmem:[%s4445_s26 + $0x28] sm:$0xff] %v2217_v21  ;;  %v2222_v5 = vsub.f32 %v4218_v52, %v2105_v2  ;;  %v2107_v63 = vmul.f32 0.6931472, %v3037_v29  ;;  %v1983_v8 = vpop.xlane.xlu1 %1982 }
 0x3c1   : > { %v3039_v49 = vpop.eup %3038  ;;  %3048 = vlog2.f32 %v1983_v8 }
 0x3c2   : > { %2286 = vst [vmem:[%s4445_s26 + $0x50] sm:$0xff] %v2222_v5  ;;  %v2223_v37 = vsub.f32 %v4222_v40, %v2107_v63  ;;  %v2101_v32 = vmul.f32 0.6931472, %v3039_v49  ;;  %v1993_v13 = vpop.xlane.xlu0 %1992 }
 0x3c3   : > { %v3041_v38 = vpop.eup %3040  ;;  %3050 = vlog2.f32 %v1993_v13 }
 0x3c4   : > { %2287 = vst [vmem:[%s4445_s26 + $0x58] sm:$0xff] %v2223_v37  ;;  %v2220_v7 = vsub.f32 %v4226_v57, %v2101_v32  ;;  %v2103_v12 = vmul.f32 0.6931472, %v3041_v38  ;;  %v1995_v33 = vpop.xlane.xlu1 %1994 }
 0x3c5   : > { %v3043_v52 = vpop.eup %3042  ;;  %3052 = vlog2.f32 %v1995_v33 }
 0x3c6   : > { %2284 = vst [vmem:[%s4445_s26 + $0x40] sm:$0xff] %v2220_v7  ;;  %v2221_v11 = vsub.f32 %v4230_v42, %v2103_v12  ;;  %v2113_v53 = vmul.f32 0.6931472, %v3043_v52  ;;  %v1989_v20 = vpop.xlane.xlu0 %1988 }
 0x3c7   : > { %v3045_v40 = vpop.eup %3044  ;;  %3054 = vlog2.f32 %v1989_v20 }
 0x3c8   : > { %2285 = vst [vmem:[%s4445_s26 + $0x48] sm:$0xff] %v2221_v11  ;;  %v2226_v19 = vsub.f32 %v4234_v59, %v2113_v53  ;;  %v2115_v21 = vmul.f32 0.6931472, %v3045_v40  ;;  %v1991_v2 = vpop.xlane.xlu1 %1990 }
 0x3c9   : > { %v3047_v57 = vpop.eup %3046  ;;  %3056 = vlog2.f32 %v1991_v2 }
 0x3ca   : > { %2290 = vst [vmem:[%s4445_s26 + $0x70] sm:$0xff] %v2226_v19  ;;  %v2227_v24 = vsub.f32 %v4238_v34, %v2115_v21  ;;  %v2109_v29 = vmul.f32 0.6931472, %v3047_v57  ;;  %v2001_v5 = vpop.xlane.xlu0 %2000 }
 0x3cb   : > { %v3049_v42 = vpop.eup %3048  ;;  %3058 = vlog2.f32 %v2001_v5 }
 0x3cc   : > { %2291 = vst [vmem:[%s4445_s26 + $0x78] sm:$0xff] %v2227_v24  ;;  %v2224_v63 = vsub.f32 %v4242_v31, %v2109_v29  ;;  %v2111_v8 = vmul.f32 0.6931472, %v3049_v42  ;;  %v2003_v49 = vpop.xlane.xlu1 %2002 }
 0x3cd   : > { %v3051_v59 = vpop.eup %3050  ;;  %3060 = vlog2.f32 %v2003_v49 }
 0x3ce   : > { %2288 = vst [vmem:[%s4445_s26 + $0x60] sm:$0xff] %v2224_v63  ;;  %v2225_v37 = vsub.f32 %v4246_v62, %v2111_v8  ;;  %v2121_v32 = vmul.f32 0.6931472, %v3051_v59  ;;  %v1997_v13 = vpop.xlane.xlu0 %1996 }
 0x3cf   : > { %v3053_v34 = vpop.eup %3052  ;;  %3062 = vlog2.f32 %v1997_v13 }
 0x3d0   : > { %2289 = vst [vmem:[%s4445_s26 + $0x68] sm:$0xff] %v2225_v37  ;;  %v2230_v38 = vsub.f32 %v4250_v15, %v2121_v32  ;;  %v2123_v7 = vmul.f32 0.6931472, %v3053_v34  ;;  %v1999_v12 = vpop.xlane.xlu1 %1998 }
 0x3d1   : > { %v3055_v31 = vpop.eup %3054  ;;  %3064 = vlog2.f32 %v1999_v12 }
 0x3d2   : > { %2294 = vst [vmem:[%s4445_s26 + $0x90] sm:$0xff] %v2230_v38  ;;  %v2231_v33 = vsub.f32 %v4254_v36, %v2123_v7  ;;  %v2117_v52 = vmul.f32 0.6931472, %v3055_v31  ;;  %v2009_v11 = vpop.xlane.xlu0 %2008 }
 0x3d3   : > { %v3057_v62 = vpop.eup %3056  ;;  %3066 = vlog2.f32 %v2009_v11 }
 0x3d4   : > { %2295 = vst [vmem:[%s4445_s26 + $0x98] sm:$0xff] %v2231_v33  ;;  %v2228_v53 = vsub.f32 %v4258_v45, %v2117_v52  ;;  %v2119_v20 = vmul.f32 0.6931472, %v3057_v62  ;;  %v2011_v40 = vpop.xlane.xlu1 %2010 }
 0x3d5   : > { %v3059_v15 = vpop.eup %3058  ;;  %3068 = vlog2.f32 %v2011_v40 }
 0x3d6   : > { %2292 = vst [vmem:[%s4445_s26 + $0x80] sm:$0xff] %v2228_v53  ;;  %v2229_v19 = vsub.f32 %v4262_v4, %v2119_v20  ;;  %v2129_v21 = vmul.f32 0.6931472, %v3059_v15  ;;  %v2005_v2 = vpop.xlane.xlu0 %2004 }
 0x3d7   : > { %v3061_v36 = vpop.eup %3060  ;;  %3070 = vlog2.f32 %v2005_v2 }
 0x3d8   : > { %2293 = vst [vmem:[%s4445_s26 + $0x88] sm:$0xff] %v2229_v19  ;;  %v2234_v57 = vsub.f32 %v4266_v44, %v2129_v21  ;;  %v2131_v24 = vmul.f32 0.6931472, %v3061_v36  ;;  %v2007_v29 = vpop.xlane.xlu1 %2006 }
 0x3d9   : > { %v3063_v45 = vpop.eup %3062  ;;  %3072 = vlog2.f32 %v2007_v29 }
 0x3da   : > { %2298 = vst [vmem:[%s4445_s26 + $0xb0] sm:$0xff] %v2234_v57  ;;  %v2235_v5 = vsub.f32 %v4270_v60, %v2131_v24  ;;  %v2125_v42 = vmul.f32 0.6931472, %v3063_v45  ;;  %v2017_v63 = vpop.xlane.xlu0 %2016 }
 0x3db   : > { %v3065_v4 = vpop.eup %3064  ;;  %3074 = vlog2.f32 %v2017_v63 }
 0x3dc   : > { %2299 = vst [vmem:[%s4445_s26 + $0xb8] sm:$0xff] %v2235_v5  ;;  %v2232_v8 = vsub.f32 %v4274_v39, %v2125_v42  ;;  %v2127_v49 = vmul.f32 0.6931472, %v3065_v4  ;;  %v2019_v59 = vpop.xlane.xlu1 %2018 }
 0x3dd   : > { %v3067_v44 = vpop.eup %3066  ;;  %3076 = vlog2.f32 %v2019_v59 }
 0x3de   : > { %2296 = vst [vmem:[%s4445_s26 + $0xa0] sm:$0xff] %v2232_v8  ;;  %v2233_v37 = vsub.f32 %v4278_v51, %v2127_v49  ;;  %v2137_v32 = vmul.f32 0.6931472, %v3067_v44  ;;  %v2013_v13 = vpop.xlane.xlu0 %2012 }
 0x3df   : > { %v3069_v60 = vpop.eup %3068  ;;  %3078 = vlog2.f32 %v2013_v13 }
 0x3e0   : > { %2297 = vst [vmem:[%s4445_s26 + $0xa8] sm:$0xff] %v2233_v37  ;;  %v2238_v34 = vsub.f32 %v4282_v35, %v2137_v32  ;;  %v2139_v38 = vmul.f32 0.6931472, %v3069_v60  ;;  %v2015_v7 = vpop.xlane.xlu1 %2014 }
 0x3e1   : > { %v3071_v39 = vpop.eup %3070  ;;  %3080 = vlog2.f32 %v2015_v7 }
 0x3e2   : > { %2302 = vst [vmem:[%s4445_s26 + $0xd0] sm:$0xff] %v2238_v34  ;;  %v2239_v12 = vsub.f32 %v4286_v3, %v2139_v38  ;;  %v2133_v31 = vmul.f32 0.6931472, %v3071_v39  ;;  %v2025_v33 = vpop.xlane.xlu0 %2024 }
 0x3e3   : > { %v3073_v51 = vpop.eup %3072  ;;  %3082 = vlog2.f32 %v2025_v33 }
 0x3e4   : > { %2303 = vst [vmem:[%s4445_s26 + $0xd8] sm:$0xff] %v2239_v12  ;;  %v2236_v52 = vsub.f32 %v4290_v58, %v2133_v31  ;;  %v2135_v11 = vmul.f32 0.6931472, %v3073_v51  ;;  %v2027_v62 = vpop.xlane.xlu1 %2026 }
 0x3e5   : > { %v3075_v35 = vpop.eup %3074  ;;  %3084 = vlog2.f32 %v2027_v62 }
 0x3e6   : > { %2300 = vst [vmem:[%s4445_s26 + $0xc0] sm:$0xff] %v2236_v52  ;;  %v2237_v53 = vsub.f32 %v4294_v22, %v2135_v11  ;;  %v2145_v20 = vmul.f32 0.6931472, %v3075_v35  ;;  %v2021_v40 = vpop.xlane.xlu0 %2020 }
 0x3e7   : > { %v3077_v3 = vpop.eup %3076  ;;  %3086 = vlog2.f32 %v2021_v40 }
 0x3e8   : > { %2301 = vst [vmem:[%s4445_s26 + $0xc8] sm:$0xff] %v2237_v53  ;;  %v2242_v15 = vsub.f32 %v4298_v61, %v2145_v20  ;;  %v2147_v19 = vmul.f32 0.6931472, %v3077_v3  ;;  %v2023_v21 = vpop.xlane.xlu1 %2022 }
 0x3e9   : > { %v3079_v58 = vpop.eup %3078  ;;  %3088 = vlog2.f32 %v2023_v21 }
 0x3ea   : > { %2306 = vst [vmem:[%s4445_s26 + $0xf0] sm:$0xff] %v2242_v15  ;;  %v2243_v2 = vsub.f32 %v4302_v6, %v2147_v19  ;;  %v2141_v36 = vmul.f32 0.6931472, %v3079_v58  ;;  %v2033_v57 = vpop.xlane.xlu0 %2032 }
 0x3eb   : > { %v3081_v22 = vpop.eup %3080  ;;  %3090 = vlog2.f32 %v2033_v57 }
 0x3ec   : > { %2307 = vst [vmem:[%s4445_s26 + $0xf8] sm:$0xff] %v2243_v2  ;;  %v2240_v24 = vsub.f32 %v4306_v10, %v2141_v36  ;;  %v2143_v29 = vmul.f32 0.6931472, %v3081_v22  ;;  %v2035_v45 = vpop.xlane.xlu1 %2034 }
 0x3ed   : > { %v3083_v61 = vpop.eup %3082  ;;  %3092 = vlog2.f32 %v2035_v45 }
 0x3ee   : > { %2304 = vst [vmem:[%s4445_s26 + $0xe0] sm:$0xff] %v2240_v24  ;;  %v2241_v5 = vsub.f32 %v4310_v41, %v2143_v29  ;;  %v2153_v42 = vmul.f32 0.6931472, %v3083_v61  ;;  %v2029_v63 = vpop.xlane.xlu0 %2028 }
 0x3ef   : > { %v3085_v6 = vpop.eup %3084  ;;  %3094 = vlog2.f32 %v2029_v63 }
 0x3f0   : > { %2305 = vst [vmem:[%s4445_s26 + $0xe8] sm:$0xff] %v2241_v5  ;;  %v2246_v4 = vsub.f32 %v4314_v14, %v2153_v42  ;;  %v2155_v8 = vmul.f32 0.6931472, %v3085_v6  ;;  %v2031_v49 = vpop.xlane.xlu1 %2030 }
 0x3f1   : > { %v3087_v10 = vpop.eup %3086  ;;  %3096 = vlog2.f32 %v2031_v49 }
 0x3f2   : > { %2310 = vst [vmem:[%s4445_s26 + $0x110] sm:$0xff] %v2246_v4  ;;  %v2247_v59 = vsub.f32 %v4318_v54, %v2155_v8  ;;  %v2149_v44 = vmul.f32 0.6931472, %v3087_v10  ;;  %v2041_v37 = vpop.xlane.xlu0 %2040 }
 0x3f3   : > { %v3089_v41 = vpop.eup %3088  ;;  %3098 = vlog2.f32 %v2041_v37 }
 0x3f4   : > { %2311 = vst [vmem:[%s4445_s26 + $0x118] sm:$0xff] %v2247_v59  ;;  %v2244_v32 = vsub.f32 %v4322_v30, %v2149_v44  ;;  %v2151_v13 = vmul.f32 0.6931472, %v3089_v41  ;;  %v2043_v60 = vpop.xlane.xlu1 %2042 }
 0x3f5   : > { %v3091_v14 = vpop.eup %3090  ;;  %3100 = vlog2.f32 %v2043_v60  ;;  %v4749_v60 = vld [vmem:[#allocation17_spill] sm:$0xff] }
 0x3f6   : > { %2308 = vst [vmem:[%s4445_s26 + $0x100] sm:$0xff] %v2244_v32  ;;  %v2245_v34 = vsub.f32 %v4326_v55, %v2151_v13  ;;  %v2161_v38 = vmul.f32 0.6931472, %v3091_v14  ;;  %v2037_v7 = vpop.xlane.xlu0 %2036 }
 0x3f7   : > { %v3093_v54 = vpop.eup %3092  ;;  %3102 = vlog2.f32 %v2037_v7  ;;  %v4750_v7 = vld [vmem:[#allocation18_spill] sm:$0xff] }
 0x3f8   : > { %2309 = vst [vmem:[%s4445_s26 + $0x108] sm:$0xff] %v2245_v34  ;;  %v2250_v39 = vsub.f32 %v4330_v9, %v2161_v38  ;;  %v2163_v12 = vmul.f32 0.6931472, %v3093_v54  ;;  %v2039_v31 = vpop.xlane.xlu1 %2038 }
 0x3f9   : > { %v3095_v30 = vpop.eup %3094  ;;  %3104 = vlog2.f32 %v2039_v31  ;;  %v4751_v31 = vld [vmem:[#allocation19_spill] sm:$0xff] }
 0x3fa   : > { %2314 = vst [vmem:[%s4445_s26 + $0x130] sm:$0xff] %v2250_v39  ;;  %v2251_v33 = vsub.f32 %v4334_v46, %v2163_v12  ;;  %v2157_v51 = vmul.f32 0.6931472, %v3095_v30  ;;  %v2049_v52 = vpop.xlane.xlu0 %2048 }
 0x3fb   : > { %v3097_v55 = vpop.eup %3096  ;;  %3106 = vlog2.f32 %v2049_v52 }
 0x3fc   : > { %2315 = vst [vmem:[%s4445_s26 + $0x138] sm:$0xff] %v2251_v33  ;;  %v2248_v11 = vsub.f32 %v4338_v47, %v2157_v51  ;;  %v2159_v62 = vmul.f32 0.6931472, %v3097_v55  ;;  %v2051_v35 = vpop.xlane.xlu1 %2050  ;;  %v4752_v55 = vld [vmem:[#allocation20_spill] sm:$0xff] }
 0x3fd   : > { %v3099_v9 = vpop.eup %3098  ;;  %3108 = vlog2.f32 %v2051_v35 }
 0x3fe   : > { %2312 = vst [vmem:[%s4445_s26 + $0x120] sm:$0xff] %v2248_v11  ;;  %v2249_v53 = vsub.f32 %v4342_v28, %v2159_v62  ;;  %v2169_v20 = vmul.f32 0.6931472, %v3099_v9  ;;  %v2045_v40 = vpop.xlane.xlu0 %2044 }
 0x3ff   : > { %v3101_v46 = vpop.eup %3100  ;;  %3110 = vlog2.f32 %v2045_v40 }
 0x400   : > { %2313 = vst [vmem:[%s4445_s26 + $0x128] sm:$0xff] %v2249_v53  ;;  %v2254_v3 = vsub.f32 %v4346_v25, %v2169_v20  ;;  %v2171_v15 = vmul.f32 0.6931472, %v3101_v46  ;;  %v2047_v19 = vpop.xlane.xlu1 %2046  ;;  %v4753_v53 = vld [vmem:[#allocation21_spill] sm:$0xff] }
 0x401   : > { %v3103_v47 = vpop.eup %3102  ;;  %3112 = vlog2.f32 %v2047_v19 }
 0x402   : > { %2318 = vst [vmem:[%s4445_s26 + $0x150] sm:$0xff] %v2254_v3  ;;  %v2255_v21 = vsub.f32 %v4350_v26, %v2171_v15  ;;  %v2165_v58 = vmul.f32 0.6931472, %v3103_v47  ;;  %v2057_v2 = vpop.xlane.xlu0 %2056  ;;  %v4754_v3 = vld [vmem:[#allocation22_spill] sm:$0xff] }
 0x403   : > { %v3105_v28 = vpop.eup %3104  ;;  %3114 = vlog2.f32 %v2057_v2 }
 0x404   : > { %2319 = vst [vmem:[%s4445_s26 + $0x158] sm:$0xff] %v2255_v21  ;;  %v2252_v36 = vsub.f32 %v4354_v18, %v2165_v58  ;;  %v2167_v57 = vmul.f32 0.6931472, %v3105_v28  ;;  %v2059_v22 = vpop.xlane.xlu1 %2058  ;;  %v4755_v21 = vld [vmem:[#allocation23_spill] sm:$0xff] }
 0x405   : > { %v3107_v25 = vpop.eup %3106  ;;  %3116 = vlog2.f32 %v2059_v22 }
 0x406   : > { %2316 = vst [vmem:[%s4445_s26 + $0x140] sm:$0xff] %v2252_v36  ;;  %v2253_v24 = vsub.f32 %v4358_v17, %v2167_v57  ;;  %v2177_v29 = vmul.f32 0.6931472, %v3107_v25  ;;  %v2053_v45 = vpop.xlane.xlu0 %2052  ;;  %v4756_v57 = vld [vmem:[#allocation5_spill] sm:$0xff] }
 0x407   : > { %v3109_v26 = vpop.eup %3108  ;;  %3118 = vlog2.f32 %v2053_v45  ;;  %v4757_v45 = vld [vmem:[#allocation6_spill] sm:$0xff] }
 0x408   : > { %2317 = vst [vmem:[%s4445_s26 + $0x148] sm:$0xff] %v2253_v24  ;;  %v2258_v61 = vsub.f32 %v4362_v48, %v2177_v29  ;;  %v2179_v5 = vmul.f32 0.6931472, %v3109_v26  ;;  %v2055_v42 = vpop.xlane.xlu1 %2054 }
 0x409   : > { %v3111_v18 = vpop.eup %3110  ;;  %3120 = vlog2.f32 %v2055_v42 }
 0x40a   : > { %2322 = vst [vmem:[%s4445_s26 + $0x170] sm:$0xff] %v2258_v61  ;;  %v2259_v63 = vsub.f32 %v4366_v16, %v2179_v5  ;;  %v2173_v6 = vmul.f32 0.6931472, %v3111_v18  ;;  %v2065_v4 = vpop.xlane.xlu0 %2064  ;;  %v4758_v18 = vld [vmem:[#allocation7_spill] sm:$0xff] }
 0x40b   : > { %v3113_v17 = vpop.eup %3112  ;;  %3122 = vlog2.f32 %v2065_v4 }
 0x40c   : > { %2323 = vst [vmem:[%s4445_s26 + $0x178] sm:$0xff] %v2259_v63  ;;  %v2256_v8 = vsub.f32 %v4370_v56, %v2173_v6  ;;  %v2175_v49 = vmul.f32 0.6931472, %v3113_v17  ;;  %v2067_v10 = vpop.xlane.xlu1 %2066  ;;  %v4759_v17 = vld [vmem:[#allocation8_spill] sm:$0xff] }
 0x40d   : > { %v3115_v48 = vpop.eup %3114  ;;  %3124 = vlog2.f32 %v2067_v10 }
 0x40e   : > { %2320 = vst [vmem:[%s4445_s26 + $0x160] sm:$0xff] %v2256_v8  ;;  %v2257_v59 = vsub.f32 %v4374_v43, %v2175_v49  ;;  %v2185_v44 = vmul.f32 0.6931472, %v3115_v48  ;;  %v2061_v37 = vpop.xlane.xlu0 %2060 }
 0x40f   : > { %v3117_v16 = vpop.eup %3116  ;;  %3126 = vlog2.f32 %v2061_v37 }
 0x410   : > { %2321 = vst [vmem:[%s4445_s26 + $0x168] sm:$0xff] %v2257_v59  ;;  %v2262_v41 = vsub.f32 %v4378_v23, %v2185_v44  ;;  %v2187_v32 = vmul.f32 0.6931472, %v3117_v16  ;;  %v2063_v13 = vpop.xlane.xlu1 %2062 }
 0x411   : > { %v3119_v56 = vpop.eup %3118  ;;  %3128 = vlog2.f32 %v2063_v13 }
 0x412   : > { %2326 = vst [vmem:[%s4445_s26 + $0x190] sm:$0xff] %v2262_v41  ;;  %v2263_v14 = vsub.f32 %v4749_v60, %v2187_v32  ;;  %v2181_v34 = vmul.f32 0.6931472, %v3119_v56  ;;  %v2073_v38 = vpop.xlane.xlu0 %2072 }
 0x413   : > { %v3121_v43 = vpop.eup %3120  ;;  %3130 = vlog2.f32 %v2073_v38 }
 0x414   : > { %2327 = vst [vmem:[%s4445_s26 + $0x198] sm:$0xff] %v2263_v14  ;;  %v2260_v54 = vsub.f32 %v4750_v7, %v2181_v34  ;;  %v2183_v39 = vmul.f32 0.6931472, %v3121_v43  ;;  %v2075_v12 = vpop.xlane.xlu1 %2074 }
 0x415   : > { %v3123_v23 = vpop.eup %3122  ;;  %3132 = vlog2.f32 %v2075_v12 }
 0x416   : > { %2324 = vst [vmem:[%s4445_s26 + $0x180] sm:$0xff] %v2260_v54  ;;  %v2261_v30 = vsub.f32 %v4751_v31, %v2183_v39  ;;  %v2193_v33 = vmul.f32 0.6931472, %v3123_v23  ;;  %v2069_v51 = vpop.xlane.xlu0 %2068 }
 0x417   : > { %v3125_v52 = vpop.eup %3124  ;;  %3134 = vlog2.f32 %v2069_v51 }
 0x418   : > { %2325 = vst [vmem:[%s4445_s26 + $0x188] sm:$0xff] %v2261_v30  ;;  %v2266_v11 = vsub.f32 %v4752_v55, %v2193_v33  ;;  %v2195_v62 = vmul.f32 0.6931472, %v3125_v52  ;;  %v2071_v35 = vpop.xlane.xlu1 %2070 }
 0x419   : > { %v3127_v9 = vpop.eup %3126  ;;  %3136 = vlog2.f32 %v2071_v35 }
 0x41a   : > { %2330 = vst [vmem:[%s4445_s26 + $0x1b0] sm:$0xff] %v2266_v11  ;;  %v2267_v20 = vsub.f32 %v4753_v53, %v2195_v62  ;;  %v2189_v40 = vmul.f32 0.6931472, %v3127_v9 }
 0x41b   : > { %v3129_v46 = vpop.eup %3128 }
 0x41c   : > { %2331 = vst [vmem:[%s4445_s26 + $0x1b8] sm:$0xff] %v2267_v20  ;;  %v2264_v15 = vsub.f32 %v4754_v3, %v2189_v40  ;;  %v2191_v19 = vmul.f32 0.6931472, %v3129_v46 }
 0x41d   : > { %v3131_v47 = vpop.eup %3130 }
 0x41e   : > { %2328 = vst [vmem:[%s4445_s26 + $0x1a0] sm:$0xff] %v2264_v15  ;;  %v2265_v58 = vsub.f32 %v4755_v21, %v2191_v19  ;;  %v2201_v2 = vmul.f32 0.6931472, %v3131_v47  ;;  %v2077_v28 = vpop.xlane.xlu0 %2076 }
 0x41f   : > { %v3133_v36 = vpop.eup %3132  ;;  %3138 = vlog2.f32 %v2077_v28 }
 0x420   : > { %2329 = vst [vmem:[%s4445_s26 + $0x1a8] sm:$0xff] %v2265_v58  ;;  %v2270_v22 = vsub.f32 %v4756_v57, %v2201_v2  ;;  %v2203_v25 = vmul.f32 0.6931472, %v3133_v36  ;;  %v2079_v24 = vpop.xlane.xlu1 %2078 }
 0x421   : > { %v3135_v29 = vpop.eup %3134  ;;  %3140 = vlog2.f32 %v2079_v24 }
 0x422   : > { %2334 = vst [vmem:[%s4445_s26 + $0x1d0] sm:$0xff] %v2270_v22  ;;  %v2271_v26 = vsub.f32 %v4757_v45, %v2203_v25  ;;  %v2197_v61 = vmul.f32 0.6931472, %v3135_v29  ;;  %v2081_v5 = vpop.xlane.xlu0 %2080 }
 0x423   : > { %v3137_v42 = vpop.eup %3136  ;;  %3142 = vlog2.f32 %v2081_v5 }
 0x424   : > { %2335 = vst [vmem:[%s4445_s26 + $0x1d8] sm:$0xff] %v2271_v26  ;;  %v2268_v63 = vsub.f32 %v4758_v18, %v2197_v61  ;;  %v2199_v6 = vmul.f32 0.6931472, %v3137_v42  ;;  %v2083_v4 = vpop.xlane.xlu1 %2082 }
 0x425   : > { %3144 = vlog2.f32 %v2083_v4 }
 0x426   : > { %2332 = vst [vmem:[%s4445_s26 + $0x1c0] sm:$0xff] %v2268_v63  ;;  %v2269_v8 = vsub.f32 %v4759_v17, %v2199_v6 }
 0x428   : > { %2333 = vst [vmem:[%s4445_s26 + $0x1c8] sm:$0xff] %v2269_v8 }
 0x429   : > { %v3139_v49 = vpop.eup %3138 }
 0x42a   : > { %v2205_v10 = vmul.f32 0.6931472, %v3139_v49 }
 0x42b   : > { %v3141_v48 = vpop.eup %3140 }
 0x42c   : > { %v2272_v59 = vsub.f32 %v4429_v1, %v2205_v10  ;;  %v2207_v44 = vmul.f32 0.6931472, %v3141_v48 }
 0x42d   : > { %v3143_v37 = vpop.eup %3142 }
 0x42e   : > { %2336 = vst [vmem:[%s4445_s26 + $0x1e0] sm:$0xff] %v2272_v59  ;;  %v2273_v16 = vsub.f32 %v4436_v0, %v2207_v44  ;;  %v2209_v41 = vmul.f32 0.6931472, %v3143_v37 }
 0x42f   : > { %v3145_v32 = vpop.eup %3144 }
 0x430   : > { %2337 = vst [vmem:[%s4445_s26 + $0x1e8] sm:$0xff] %v2273_v16  ;;  %v2274_v13 = vsub.f32 %v4426_v50, %v2209_v41  ;;  %v2211_v56 = vmul.f32 0.6931472, %v3145_v32 }
 0x432   : > { %2338 = vst [vmem:[%s4445_s26 + $0x1f0] sm:$0xff] %v2274_v13  ;;  %v2275_v0 = vsub.f32 %v4432_v27, %v2211_v56 }
 0x434   : > { %2339 = vst [vmem:[%s4445_s26 + $0x1f8] sm:$0xff] %v2275_v0 }
 0x435   : > { %3159 = shalt.err (!%p3156_p3)
}
 0x436   : > { %s3160_s14 = scalar_lea.hbm %s4576_s9, 8192  ;;  %s3164_s17 = scalar_lea.hbm %s4631_s5, 16384 }
 0x437   : > { %p3161_p4 = scmp.ne.s32.totalorder %s4576_s9, %s3160_s14  ;;  %p3165_p9 = scmp.lt.u32.totalorder %s4576_s9, %s4631_s5 }
 0x438   : > { %p3166_p10 = scmp.lt.u32.totalorder %s3164_s17, %s3160_s14  ;;  %p3168_p12 = scmp.lt.u32.totalorder %s3160_s14, %s4576_s9 }
 0x439   : > { %p3162_p7 = pnand %p3161_p4, %p3281_p5 }
 0x43a   : > { %p3167_p11 = por %p3166_p10, %p3165_p9 }
 0x43b   : > { %p3163_p8 = pneg %p3162_p7 }
 0x43c   : > { %p3169_p13 = por %p3168_p12, %p3167_p11 }
 0x43e   : > { %p3170_p0 = pnand %p3169_p13, %p3163_p8 }
 0x440   : > { %3173 = shalt.err (!%p3170_p0)
}
 0x441   : > { %s3211_s26 = smov 128   ;;  %s3212_s30 = smov 8  }
 0x442   : > { %2711 = dma.vmem_to_hbm [thread:$0]  (%p3281_p5), %s4578_s6, 8192, %s4576_s9, %s4585_s22, %s3211_s26, %s3211_s26, %s3212_s30  }
 0x443 PF: > { %p2717_p1 = scmp.ge.s32.totalorder %s3208_s21, 2  ;;  %s2369_s7 = sand.u32 1, %s3196_s18  }
 0x444   : > { %s2370_s8 = scalar_lea.sflag [#allocation3], %s2369_s7 }
 0x445   : > { %p2714_p2 = pnand %p2717_p1, %p3285_p6 }
 0x447   : > { %3191 = dma.done.wait (!%p2714_p2), %s2370_s8, 8192  }
 0x448   : > { %3193 = vsyncadd (!%p2714_p2), %s2370_s8, 4294959104  ;;  %p15_p3 = scmp.ge.s32.totalorder %s3268_s24, 4   ;;  %s4760_s18 = smov %s3200_s19 }
 0x449   : > { %s4761_s19 = smov %s3204_s20  ;;  %s4762_s20 = smov %s3279_s27 }
 0x44a   : > { %s4763_s21 = smov %s3268_s24  ;;  %17 = sbr.rel (!%p15_p3) target bundleno = 3 (0x3), region = 75 }
 0x451   :  { %2375 = vsyncpa [#allocation3], 1 }
 0x452   :  { %2377 = vsyncpa [#allocation3 + $0x1], 1 }

</bundles_post_ra>
